<compile_context>
chip_gen: v6e
topology: v6e:2x2x1
jax: 0.10.0
libtpu: 0.0.40
codegen_flags: <defaults>
</compile_context>

<pallas_src>
import functools

import numpy as np

import jax
import jax.numpy as jnp
from jax.experimental import pallas as pl
from jax.experimental.pallas import tpu as pltpu


# ----------------------------------------------------------------------------
# constants (cached across calls — do not rebuild in HBM every invocation)
# ----------------------------------------------------------------------------
@functools.lru_cache(maxsize=None)
def _dup_matrix(nx, dtype_name):
    """(nx, 2*nx) 0/1 matrix: out col k <- in col k//2 (exact in bf16)."""
    cols = np.arange(2 * nx)
    d = (cols[None, :] // 2 == np.arange(nx)[:, None]).astype(np.float32)
    return jnp.asarray(d, dtype=dtype_name)


def _choose_row_tile(bs, ny, nx, target_lanes=2048):
    """Largest row tile whose flat chunk is lane-aligned and VMEM-friendly."""
    cands = [t for t in range(ny, 0, -1) if ny % t == 0]
    aligned = [t for t in cands if (t * nx) % 128 == 0]
    pool = aligned if aligned else [ny]          # fallback: full-spatial block
    ok = [t for t in pool if t * nx <= max(target_lanes, nx)]
    ty = max(ok) if ok else min(pool)
    # leave at least 2 grid steps so both v7x TensorCores get work
    if bs * (ny // ty) < 2:
        smaller = [t for t in pool if t < ty and bs * (ny // t) >= 2]
        if smaller:
            ty = max(smaller)
    return ty


# ----------------------------------------------------------------------------
# kernel
# ----------------------------------------------------------------------------
def _upsample_conv_kernel(x_ref, w_ref, b_ref, d_ref, o_ref, *,
                          ty, nx, neg_slope, compute_dtype):
    """One (batch, row-chunk) block.

    x_ref : (1, c1, T)      T = ty*nx contiguous flat chunk of the NCHW input
    w_ref : (c2, c1)        conv weight with BN scale folded in (compute_dtype)
    b_ref : (c2, 1)         folded BN bias (f32)
    d_ref : (nx, 2*nx)      0/1 column-duplication matrix (compute_dtype)
    o_ref : (1, c2, 4*T)    contiguous flat chunk of the NCHW output
    """
    x = x_ref[0].astype(compute_dtype)                                  # (c1, T)
    a = jnp.dot(w_ref[...], x, preferred_element_type=jnp.float32)      # (c2, T)
    a = a + b_ref[...]                                                   # BN bias
    a = jnp.where(a > 0, a, a * neg_slope)                               # LeakyReLU
    a = a.astype(compute_dtype)
    d = d_ref[...]

    pieces = []
    for y in range(ty):                       # static unroll over rows in tile
        ay = a[:, y * nx:(y + 1) * nx]                                   # (c2, nx)
        uy = jnp.dot(ay, d, preferred_element_type=jnp.float32)          # (c2, 2nx)
        uy = uy.astype(o_ref.dtype)
        pieces.append(uy)                     # output row 2y
        pieces.append(uy)                     # output row 2y+1 (row duplication)
    o_ref[0] = jnp.concatenate(pieces, axis=-1)                          # (c2, 4T)


# ----------------------------------------------------------------------------
# wrapper
# ----------------------------------------------------------------------------
def upsample_forward(x, conv_w, bn_gamma, bn_beta, bn_mean, bn_var, *,
                     eps=1e-4, neg_slope=0.1, row_tile=None,
                     out_dtype=None, compute_dtype=jnp.bfloat16):
    """UpSample.forward (inference): x NCHW -> NCHW output at 2x spatial."""
    bs, c1, ny, nx = x.shape
    c2 = conv_w.shape[0]
    assert conv_w.shape == (c2, c1, 1, 1)
    out_dtype = x.dtype if out_dtype is None else out_dtype

    ty = _choose_row_tile(bs, ny, nx) if row_tile is None else row_tile
    assert ny % ty == 0
    T = ty * nx
    S = ny * nx
    assert (T % 128 == 0) or (ty == ny), "row tile must give a lane-aligned chunk"

    # ---- fold inference BatchNorm into the 1x1 conv (tiny host-side work) ---
    scale = bn_gamma / jnp.sqrt(bn_var + eps)                            # (c2,)
    w_f = (conv_w.reshape(c2, c1).astype(jnp.float32)
           * scale[:, None]).astype(compute_dtype)
    b_f = (bn_beta - scale * bn_mean).astype(jnp.float32).reshape(c2, 1)

    d = _dup_matrix(int(nx), np.dtype(compute_dtype).name)

    x_view = x.reshape(bs, c1, S)              # zero-copy view, native dtype

    # ---- raise the scoped VMEM limit only when the blocks actually need it --
    xb = np.dtype(x.dtype).itemsize
    ob = np.dtype(out_dtype).itemsize
    cb = np.dtype(compute_dtype).itemsize
    est = (2 * c1 * T * xb + 2 * c2 * 4 * T * ob
           + 2 * (c2 * c1 * cb + c2 * 4 + nx * 2 * nx * cb))
    vmem_limit = int(min(est * 1.25, 96 * 2**20)) if est > 30 * 2**20 else None

    kernel = functools.partial(_upsample_conv_kernel, ty=int(ty), nx=int(nx),
                               neg_slope=float(neg_slope),
                               compute_dtype=compute_dtype)

    out_flat = pl.pallas_call(
        kernel,
        out_shape=jax.ShapeDtypeStruct((bs, c2, 4 * S), out_dtype),
        grid=(bs, ny // ty),
        in_specs=[
            pl.BlockSpec((1, c1, T), lambda b, j: (b, 0, j)),
            pl.BlockSpec((c2, c1), lambda b, j: (0, 0)),
            pl.BlockSpec((c2, 1), lambda b, j: (0, 0)),
            pl.BlockSpec((nx, 2 * nx), lambda b, j: (0, 0)),
        ],
        out_specs=pl.BlockSpec((1, c2, 4 * T), lambda b, j: (b, 0, j)),
        compiler_params=pltpu.CompilerParams(
            dimension_semantics=("parallel", "parallel"),
            vmem_limit_bytes=vmem_limit),
    )(x_view, w_f, b_f, d)

    return out_flat.reshape(bs, c2, 2 * ny, 2 * nx)      # zero-copy


# ----------------------------------------------------------------------------
# pure-JAX reference (mirrors the PyTorch inference forward)
# ----------------------------------------------------------------------------
def _reference(x, conv_w, gamma, beta, mean, var, *, eps=1e-4, neg_slope=0.1):
    c2, c1 = conv_w.shape[0], conv_w.shape[1]
    z = jnp.einsum("oi,biyx->boyx", conv_w.reshape(c2, c1), x,
                   precision=jax.lax.Precision.HIGHEST)
    scale = gamma / jnp.sqrt(var + eps)
    z = z * scale[None, :, None, None] + (beta - scale * mean)[None, :, None, None]
    z = jnp.where(z > 0, z, z * neg_slope)
    return jnp.repeat(jnp.repeat(z, 2, axis=2), 2, axis=3)


if __name__ == "__main__":
    key = jax.random.PRNGKey(0)
    bs, c1, c2, ny, nx = 2, 32, 64, 16, 16
    k1, k2, k3, k4, k5, k6 = jax.random.split(key, 6)

    x = jax.random.normal(k1, (bs, c1, ny, nx), jnp.float32)
    conv_w = 0.1 * jax.random.normal(k2, (c2, c1, 1, 1), jnp.float32)
    bn_gamma = 1.0 + 0.1 * jax.random.normal(k3, (c2,), jnp.float32)
    bn_beta = 0.1 * jax.random.normal(k4, (c2,), jnp.float32)
    bn_mean = 0.1 * jax.random.normal(k5, (c2,), jnp.float32)
    bn_var = jax.nn.softplus(jax.random.normal(k6, (c2,), jnp.float32)) + 0.5

    out = upsample_forward(x, conv_w, bn_gamma, bn_beta, bn_mean, bn_var)
    out = jax.block_until_ready(out)

    ref = _reference(x, conv_w, bn_gamma, bn_beta, bn_mean, bn_var)
    assert out.shape == (bs, c2, 2 * ny, 2 * nx)
    max_err = float(jnp.max(jnp.abs(out - ref)))
    # bf16 matmul operands (f32 accumulation) -> loose-ish tolerance
    assert jnp.allclose(out, ref, atol=5e-2, rtol=5e-2), max_err

    print("KERNEL_OK")
</pallas_src>

<mosaic_0001>
module attributes {stable_mosaic.version = 11 : i64} {
  func.func @_upsample_conv_kernel(%arg0: i32, %arg1: i32, %arg2: memref<1x32x256xf32, #tpu.memory_space<vmem>>, %arg3: memref<64x32xbf16, #tpu.memory_space<vmem>>, %arg4: memref<64x1xf32, #tpu.memory_space<vmem>>, %arg5: memref<16x32xbf16, #tpu.memory_space<vmem>>, %arg6: memref<1x64x1024xf32, #tpu.memory_space<vmem>>) attributes {dimension_semantics = [#tpu.dimension_semantics<parallel>, #tpu.dimension_semantics<parallel>], iteration_bounds = array<i64: 2, 1>, scalar_prefetch = 0 : i64, scratch_operands = 0 : i64, tpu.core_type = #tpu.core_type<tc>, window_params = [{transform_indices = @transform_0, window_bounds = array<i64: 1, 32, 256>}, {pipeline_mode = #tpu.pipeline_mode<synchronous>, transform_indices = @transform_1, window_bounds = array<i64: 64, 32>}, {pipeline_mode = #tpu.pipeline_mode<synchronous>, transform_indices = @transform_2, window_bounds = array<i64: 64, 1>}, {pipeline_mode = #tpu.pipeline_mode<synchronous>, transform_indices = @transform_3, window_bounds = array<i64: 16, 32>}, {transform_indices = @transform_4, window_bounds = array<i64: 1, 64, 1024>}]} {
    %c0 = arith.constant 0 : index
    %c0_0 = arith.constant 0 : index
    %c0_1 = arith.constant 0 : index
    %0 = vector.load %arg2[%c0, %c0_0, %c0_1] : memref<1x32x256xf32, #tpu.memory_space<vmem>>, vector<1x32x256xf32>
    %1 = vector.shape_cast %0 : vector<1x32x256xf32> to vector<32x256xf32>
    %2 = arith.truncf %1 : vector<32x256xf32> to vector<32x256xbf16>
    %c0_2 = arith.constant 0 : index
    %c0_3 = arith.constant 0 : index
    %3 = vector.load %arg3[%c0_2, %c0_3] : memref<64x32xbf16, #tpu.memory_space<vmem>>, vector<64x32xbf16>
    %cst = arith.constant dense<0.000000e+00> : vector<64x256xf32>
    %4 = tpu.matmul %3, %2, %cst {dimension_numbers = #tpu.dot_dimension_numbers<[1], [0], [0], [1], [0, 0, 1, 1], [], []>} : vector<64x32xbf16>, vector<32x256xbf16>, vector<64x256xf32> -> vector<64x256xf32>
    %c0_4 = arith.constant 0 : index
    %c0_5 = arith.constant 0 : index
    %5 = vector.load %arg4[%c0_4, %c0_5] : memref<64x1xf32, #tpu.memory_space<vmem>>, vector<64x1xf32>
    %6 = vector.broadcast %5 : vector<64x1xf32> to vector<64x256xf32>
    %7 = arith.addf %4, %6 : vector<64x256xf32>
    %cst_6 = arith.constant 0.000000e+00 : f32
    %8 = vector.broadcast %cst_6 : f32 to vector<64x256xf32>
    %9 = arith.cmpf ogt, %7, %8 : vector<64x256xf32>
    %cst_7 = arith.constant 1.000000e-01 : f32
    %10 = vector.broadcast %cst_7 : f32 to vector<64x256xf32>
    %11 = arith.mulf %7, %10 : vector<64x256xf32>
    %12 = arith.select %9, %7, %11 : vector<64x256xi1>, vector<64x256xf32>
    %13 = arith.truncf %12 : vector<64x256xf32> to vector<64x256xbf16>
    %c0_8 = arith.constant 0 : index
    %c0_9 = arith.constant 0 : index
    %14 = vector.load %arg5[%c0_8, %c0_9] : memref<16x32xbf16, #tpu.memory_space<vmem>>, vector<16x32xbf16>
    %15 = vector.extract_strided_slice %13 {offsets = [0, 0], sizes = [64, 16], strides = [1, 1]} : vector<64x256xbf16> to vector<64x16xbf16>
    %cst_10 = arith.constant dense<0.000000e+00> : vector<64x32xf32>
    %16 = tpu.matmul %15, %14, %cst_10 {dimension_numbers = #tpu.dot_dimension_numbers<[1], [0], [0], [1], [0, 0, 1, 1], [], []>} : vector<64x16xbf16>, vector<16x32xbf16>, vector<64x32xf32> -> vector<64x32xf32>
    %17 = vector.extract_strided_slice %13 {offsets = [0, 16], sizes = [64, 16], strides = [1, 1]} : vector<64x256xbf16> to vector<64x16xbf16>
    %cst_11 = arith.constant dense<0.000000e+00> : vector<64x32xf32>
    %18 = tpu.matmul %17, %14, %cst_11 {dimension_numbers = #tpu.dot_dimension_numbers<[1], [0], [0], [1], [0, 0, 1, 1], [], []>} : vector<64x16xbf16>, vector<16x32xbf16>, vector<64x32xf32> -> vector<64x32xf32>
    %19 = vector.extract_strided_slice %13 {offsets = [0, 32], sizes = [64, 16], strides = [1, 1]} : vector<64x256xbf16> to vector<64x16xbf16>
    %cst_12 = arith.constant dense<0.000000e+00> : vector<64x32xf32>
    %20 = tpu.matmul %19, %14, %cst_12 {dimension_numbers = #tpu.dot_dimension_numbers<[1], [0], [0], [1], [0, 0, 1, 1], [], []>} : vector<64x16xbf16>, vector<16x32xbf16>, vector<64x32xf32> -> vector<64x32xf32>
    %21 = vector.extract_strided_slice %13 {offsets = [0, 48], sizes = [64, 16], strides = [1, 1]} : vector<64x256xbf16> to vector<64x16xbf16>
    %cst_13 = arith.constant dense<0.000000e+00> : vector<64x32xf32>
    %22 = tpu.matmul %21, %14, %cst_13 {dimension_numbers = #tpu.dot_dimension_numbers<[1], [0], [0], [1], [0, 0, 1, 1], [], []>} : vector<64x16xbf16>, vector<16x32xbf16>, vector<64x32xf32> -> vector<64x32xf32>
    %23 = vector.extract_strided_slice %13 {offsets = [0, 64], sizes = [64, 16], strides = [1, 1]} : vector<64x256xbf16> to vector<64x16xbf16>
    %cst_14 = arith.constant dense<0.000000e+00> : vector<64x32xf32>
    %24 = tpu.matmul %23, %14, %cst_14 {dimension_numbers = #tpu.dot_dimension_numbers<[1], [0], [0], [1], [0, 0, 1, 1], [], []>} : vector<64x16xbf16>, vector<16x32xbf16>, vector<64x32xf32> -> vector<64x32xf32>
    %25 = vector.extract_strided_slice %13 {offsets = [0, 80], sizes = [64, 16], strides = [1, 1]} : vector<64x256xbf16> to vector<64x16xbf16>
    %cst_15 = arith.constant dense<0.000000e+00> : vector<64x32xf32>
    %26 = tpu.matmul %25, %14, %cst_15 {dimension_numbers = #tpu.dot_dimension_numbers<[1], [0], [0], [1], [0, 0, 1, 1], [], []>} : vector<64x16xbf16>, vector<16x32xbf16>, vector<64x32xf32> -> vector<64x32xf32>
    %27 = vector.extract_strided_slice %13 {offsets = [0, 96], sizes = [64, 16], strides = [1, 1]} : vector<64x256xbf16> to vector<64x16xbf16>
    %cst_16 = arith.constant dense<0.000000e+00> : vector<64x32xf32>
    %28 = tpu.matmul %27, %14, %cst_16 {dimension_numbers = #tpu.dot_dimension_numbers<[1], [0], [0], [1], [0, 0, 1, 1], [], []>} : vector<64x16xbf16>, vector<16x32xbf16>, vector<64x32xf32> -> vector<64x32xf32>
    %29 = vector.extract_strided_slice %13 {offsets = [0, 112], sizes = [64, 16], strides = [1, 1]} : vector<64x256xbf16> to vector<64x16xbf16>
    %cst_17 = arith.constant dense<0.000000e+00> : vector<64x32xf32>
    %30 = tpu.matmul %29, %14, %cst_17 {dimension_numbers = #tpu.dot_dimension_numbers<[1], [0], [0], [1], [0, 0, 1, 1], [], []>} : vector<64x16xbf16>, vector<16x32xbf16>, vector<64x32xf32> -> vector<64x32xf32>
    %31 = vector.extract_strided_slice %13 {offsets = [0, 128], sizes = [64, 16], strides = [1, 1]} : vector<64x256xbf16> to vector<64x16xbf16>
    %cst_18 = arith.constant dense<0.000000e+00> : vector<64x32xf32>
    %32 = tpu.matmul %31, %14, %cst_18 {dimension_numbers = #tpu.dot_dimension_numbers<[1], [0], [0], [1], [0, 0, 1, 1], [], []>} : vector<64x16xbf16>, vector<16x32xbf16>, vector<64x32xf32> -> vector<64x32xf32>
    %33 = vector.extract_strided_slice %13 {offsets = [0, 144], sizes = [64, 16], strides = [1, 1]} : vector<64x256xbf16> to vector<64x16xbf16>
    %cst_19 = arith.constant dense<0.000000e+00> : vector<64x32xf32>
    %34 = tpu.matmul %33, %14, %cst_19 {dimension_numbers = #tpu.dot_dimension_numbers<[1], [0], [0], [1], [0, 0, 1, 1], [], []>} : vector<64x16xbf16>, vector<16x32xbf16>, vector<64x32xf32> -> vector<64x32xf32>
    %35 = vector.extract_strided_slice %13 {offsets = [0, 160], sizes = [64, 16], strides = [1, 1]} : vector<64x256xbf16> to vector<64x16xbf16>
    %cst_20 = arith.constant dense<0.000000e+00> : vector<64x32xf32>
    %36 = tpu.matmul %35, %14, %cst_20 {dimension_numbers = #tpu.dot_dimension_numbers<[1], [0], [0], [1], [0, 0, 1, 1], [], []>} : vector<64x16xbf16>, vector<16x32xbf16>, vector<64x32xf32> -> vector<64x32xf32>
    %37 = vector.extract_strided_slice %13 {offsets = [0, 176], sizes = [64, 16], strides = [1, 1]} : vector<64x256xbf16> to vector<64x16xbf16>
    %cst_21 = arith.constant dense<0.000000e+00> : vector<64x32xf32>
    %38 = tpu.matmul %37, %14, %cst_21 {dimension_numbers = #tpu.dot_dimension_numbers<[1], [0], [0], [1], [0, 0, 1, 1], [], []>} : vector<64x16xbf16>, vector<16x32xbf16>, vector<64x32xf32> -> vector<64x32xf32>
    %39 = vector.extract_strided_slice %13 {offsets = [0, 192], sizes = [64, 16], strides = [1, 1]} : vector<64x256xbf16> to vector<64x16xbf16>
    %cst_22 = arith.constant dense<0.000000e+00> : vector<64x32xf32>
    %40 = tpu.matmul %39, %14, %cst_22 {dimension_numbers = #tpu.dot_dimension_numbers<[1], [0], [0], [1], [0, 0, 1, 1], [], []>} : vector<64x16xbf16>, vector<16x32xbf16>, vector<64x32xf32> -> vector<64x32xf32>
    %41 = vector.extract_strided_slice %13 {offsets = [0, 208], sizes = [64, 16], strides = [1, 1]} : vector<64x256xbf16> to vector<64x16xbf16>
    %cst_23 = arith.constant dense<0.000000e+00> : vector<64x32xf32>
    %42 = tpu.matmul %41, %14, %cst_23 {dimension_numbers = #tpu.dot_dimension_numbers<[1], [0], [0], [1], [0, 0, 1, 1], [], []>} : vector<64x16xbf16>, vector<16x32xbf16>, vector<64x32xf32> -> vector<64x32xf32>
    %43 = vector.extract_strided_slice %13 {offsets = [0, 224], sizes = [64, 16], strides = [1, 1]} : vector<64x256xbf16> to vector<64x16xbf16>
    %cst_24 = arith.constant dense<0.000000e+00> : vector<64x32xf32>
    %44 = tpu.matmul %43, %14, %cst_24 {dimension_numbers = #tpu.dot_dimension_numbers<[1], [0], [0], [1], [0, 0, 1, 1], [], []>} : vector<64x16xbf16>, vector<16x32xbf16>, vector<64x32xf32> -> vector<64x32xf32>
    %45 = vector.extract_strided_slice %13 {offsets = [0, 240], sizes = [64, 16], strides = [1, 1]} : vector<64x256xbf16> to vector<64x16xbf16>
    %cst_25 = arith.constant dense<0.000000e+00> : vector<64x32xf32>
    %46 = tpu.matmul %45, %14, %cst_25 {dimension_numbers = #tpu.dot_dimension_numbers<[1], [0], [0], [1], [0, 0, 1, 1], [], []>} : vector<64x16xbf16>, vector<16x32xbf16>, vector<64x32xf32> -> vector<64x32xf32>
    %47 = tpu.concatenate %16, %16, %18, %18, %20, %20, %22, %22, %24, %24, %26, %26, %28, %28, %30, %30 in 1 : vector<64x32xf32>, vector<64x32xf32>, vector<64x32xf32>, vector<64x32xf32>, vector<64x32xf32>, vector<64x32xf32>, vector<64x32xf32>, vector<64x32xf32>, vector<64x32xf32>, vector<64x32xf32>, vector<64x32xf32>, vector<64x32xf32>, vector<64x32xf32>, vector<64x32xf32>, vector<64x32xf32>, vector<64x32xf32> -> vector<64x512xf32>
    %48 = tpu.concatenate %32, %32, %34, %34, %36, %36, %38, %38, %40, %40, %42, %42, %44, %44, %46, %46 in 1 : vector<64x32xf32>, vector<64x32xf32>, vector<64x32xf32>, vector<64x32xf32>, vector<64x32xf32>, vector<64x32xf32>, vector<64x32xf32>, vector<64x32xf32>, vector<64x32xf32>, vector<64x32xf32>, vector<64x32xf32>, vector<64x32xf32>, vector<64x32xf32>, vector<64x32xf32>, vector<64x32xf32>, vector<64x32xf32> -> vector<64x512xf32>
    %49 = tpu.concatenate %47, %48 in 1 : vector<64x512xf32>, vector<64x512xf32> -> vector<64x1024xf32>
    %c0_26 = arith.constant 0 : index
    %c0_27 = arith.constant 0 : index
    %c0_28 = arith.constant 0 : index
    %50 = vector.load %arg6[%c0_26, %c0_27, %c0_28] : memref<1x64x1024xf32, #tpu.memory_space<vmem>>, vector<1x64x1024xf32>
    %51 = vector.shape_cast %50 : vector<1x64x1024xf32> to vector<64x1024xf32>
    %52 = vector.shape_cast %49 : vector<64x1024xf32> to vector<1x64x1024xf32>
    tpu.vector_store %arg6[%c0_26, %c0_27, %c0_28], %52 {strides = array<i32>} : memref<1x64x1024xf32, #tpu.memory_space<vmem>>, vector<1x64x1024xf32>,
    return
  }
  func.func @transform_0(%arg0: i32, %arg1: i32) -> (i32, i32, i32) {
    %c0_i32 = arith.constant 0 : i32
    %c0_i32_0 = arith.constant 0 : i32
    return %arg0, %c0_i32, %arg1 : i32, i32, i32
  }
  func.func @transform_1(%arg0: i32, %arg1: i32) -> (i32, i32) {
    %c0_i32 = arith.constant 0 : i32
    %c0_i32_0 = arith.constant 0 : i32
    %c0_i32_1 = arith.constant 0 : i32
    return %c0_i32, %c0_i32_0 : i32, i32
  }
  func.func @transform_2(%arg0: i32, %arg1: i32) -> (i32, i32) {
    %c0_i32 = arith.constant 0 : i32
    %c0_i32_0 = arith.constant 0 : i32
    %c0_i32_1 = arith.constant 0 : i32
    return %c0_i32, %c0_i32_0 : i32, i32
  }
  func.func @transform_3(%arg0: i32, %arg1: i32) -> (i32, i32) {
    %c0_i32 = arith.constant 0 : i32
    %c0_i32_0 = arith.constant 0 : i32
    %c0_i32_1 = arith.constant 0 : i32
    return %c0_i32, %c0_i32_0 : i32, i32
  }
  func.func @transform_4(%arg0: i32, %arg1: i32) -> (i32, i32, i32) {
    %c0_i32 = arith.constant 0 : i32
    %c0_i32_0 = arith.constant 0 : i32
    return %arg0, %c0_i32, %arg1 : i32, i32, i32
  }
}

</mosaic_0001>

<bundles_post_ra>
// kernel: tpu_custom_call.1
= control target key start
LH: loop header
LB: loop body
LE: loop exit
PB: predicated region body
PF: predicated region fallthrough
CT: control target
= control target key end

     0   :  { %9 = vsyncpa [#allocation3], 0  ;;  %s4898_s0 = inlined_call_operand.hbm [shape: f32[2,32,256], index: 0, kind: input, shape index: {}]   ;;  %s4899_s1 = inlined_call_operand.vmem [shape: bf16[64,32], index: 1, kind: input, shape index: {}]   ;;  %s4900_s2 = inlined_call_operand.vmem [shape: f32[64,1], index: 2, kind: input, shape index: {}]   ;;  %s4901_s3 = inlined_call_operand.vmem [shape: bf16[16,32], index: 3, kind: input, shape index: {}]   ;;  %s4902_s4 = inlined_call_operand.hbm [shape: f32[2,64,1024], index: 4, kind: output, shape index: {}]  }
   0x1   :  { %11 = vsyncpa [#allocation3 + $0x1], 0 }
   0x2   :  { %12 = vsyncpa [#allocation4], 0 }
   0x3   :  { %14 = vsyncpa [#allocation4 + $0x1], 0  ;;  %s3451_s15 = smov 0   ;;  %s3453_s16 = smov 0  }
   0x4   :  { %s3455_s17 = smov 0   ;;  %s3457_s18 = smov 0  }
   0x5   :  { %s3459_s19 = smov 0   ;;  %s3461_s20 = smov 0  }
   0x6 LB: > { %s2893_s21 = sadd.s32 4294967295, %s3411_s20   ;;  %s2894_s22 = sadd.s32 4294967294, %s3411_s20   ;;  %s3411_s20 = sphi %s3461_s20, %s20_s20   ;;  %s3407_s19 = sphi %s3459_s19, %s4913_s19   ;;  %s3403_s18 = sphi %s3457_s18, %s4912_s18   ;;  %s3399_s17 = sphi %s3455_s17, %s4911_s17   ;;  %s3395_s16 = sphi %s3453_s16, %s4910_s16   ;;  %s3391_s15 = sphi %s3451_s15, %s4909_s15  }
   0x7   : > { %s32_s23 = sadd.s32 1, %s3407_s19  ;;  %s41_s24 = sadd.s32 1, %s3399_s17 }
   0x8   : > { %p34_p0 = scmp.ge.s32.totalorder %s32_s23, 2  ;;  %p48_p1 = scmp.ne.s32.totalorder %s3399_s17, %s3395_s16 }
   0x9   : > { %p49_p2 = scmp.eq.s32.totalorder %s3411_s20, 0  ;;  %p54_p3 = scmp.ne.s32.totalorder %s3395_s16, %s3391_s15 }
   0xa   : > { %s4915_s23 = smov (%p34_p0, %s32_s23), 0  ;;  %p55_p5 = scmp.eq.s32.totalorder %s2893_s21, 0 }
   0xb   : > { %p3492_p4 = por %p49_p2, %p48_p1  ;;  %s36_s26 = ssub.s32 %s3407_s19, %s4915_s23 }
   0xc   : > { %p143_p6 = scmp.eq.s32.totalorder %s2893_s21, 1  ;;  %p39_p7 = scmp.eq.s32.totalorder %s36_s26, 0 }
   0xd   : > { %p3498_p8 = por %p55_p5, %p54_p3  ;;  %p149_p10 = scmp.eq.s32.totalorder %s2894_s22, 1 }
   0xe   : > { %p3502_p9 = por %p143_p6, %p48_p1  ;;  %p3235_p13 = scmp.lt.s32.totalorder %s3411_s20, 2 }
   0xf   : > { %s3507_s29 = scalar_select %p39_p7, %s3399_s17, %s41_s24  }
  0x10   : > { %p3509_p11 = por %p149_p10, %p54_p3  ;;  %s178_s5 = sand.u32 1, %s3399_s17  }
  0x11   : > { %s2897_s6 = sshll.u32 %s178_s5, 6  ;;  %s2981_s7 = sshll.u32 %s3407_s19, 10 }
  0x12   : > { %s190_s10 = scalar_lea.hbm %s4898_s0, %s2981_s7  ;;  %s182_s11 = scalar_lea.vmem [#allocation2], %s2897_s6 }
  0x13   : > { %s191_s12 = sshll.u32 %s182_s11, 4  ;;  %p3522_p0 = pnand %p3235_p13, %p3492_p4  ;;  %s192_s12 = int_to_ptr.vmem [resolvable:$true] %s191_s12 }
  0x14   : > { %p2900_p1 = scmp.ge.s32.totalorder %s3411_s20, 1  ;;  %s179_s14 = scalar_lea.sflag [#allocation3], %s178_s5 }
  0x15   : > { %p3305_p2 = pneg %p3522_p0  ;;  %s3316_s21 = scalar_lea.vmem %s192_s12, 1024 }
  0x16   : > { %p3317_p3 = scmp.ne.s32.totalorder %s192_s12, %s3316_s21  ;;  %s3413_s22 = smov [#allocation2]  }
  0x17   : > { %s3321_s24 = sshll.u32 %s3413_s22, 4  ;;  %s3322_s24 = int_to_ptr.vmem [resolvable:$false] %s3321_s24 }
  0x18   : > { %p3319_p5 = pnand %p3317_p3, %p3305_p2  ;;  %s3323_s26 = scalar_lea.vmem %s3322_s24, 2048 }
  0x19   : > { %p3324_p7 = scmp.lt.s32.totalorder %s192_s12, %s3322_s24  ;;  %p3325_p10 = scmp.lt.s32.totalorder %s3323_s26, %s3316_s21 }
  0x1a   : > { %p3320_p6 = pneg %p3319_p5 }
  0x1b   : > { %p3326_p12 = por %p3325_p10, %p3324_p7 }
  0x1d   : > { %p3327_p4 = pnand %p3326_p12, %p3320_p6 }
  0x1f   : > { %3330 = shalt.err (!%p3327_p4)
}
  0x20   : > { %s3414_s25 = smov 256   ;;  %s3415_s5 = smov 16  }
  0x21   : > { %3230 = dma.hbm_to_vmem [thread:$0]  (!%p3522_p0), %s190_s10, 1024, %s192_s12, %s179_s14, %s3414_s25, %s3414_s25, %s3415_s5  }
  0x22   : > { %p199_p13 = scmp.lt.s32.totalorder %s3411_s20, 3 }
  0x24   : > { %p200_p2 = pnand %p2900_p1, %p199_p13 }
  0x25   : > { %s3535_s6 = sand.u32 (!%p200_p2), 1, %s3395_s16  }
  0x26   : > { %203 = sbr.rel (%p200_p2) target bundleno = 1097 (0x449), region = 36  ;;  %s2901_s7 = sshll.u32 (!%p200_p2), %s3535_s6, 6 }
  0x27   : > { %s206_s8 = scalar_lea.sflag (!%p200_p2), [#allocation3], %s3535_s6  ;;  %s209_s9 = scalar_lea.vmem (!%p200_p2), [#allocation2], %s2901_s7 }
  0x2b   : > { %3382 = dma.done.wait (%p3498_p8), %s206_s8, 1024  }
  0x2c   : > { %3384 = vsyncadd (%p3498_p8), %s206_s8, 4294966272  ;;  %v3416_v0 = vmov 0   ;;  %v242_v1 = vld [vmem:[%s209_s9 + $0x28] sm:$0xff]  ;;  %v244_v2 = vld [vmem:[%s209_s9 + $0x38] sm:$0xff]  ;;  %vm325_vm0 = vcmask 261120   ;;  %vm475_vm3 = vcmask 130048  }
  0x2d   : > { %370 = vmatprep.mubr.bf16.mxu0 %v3416_v0  ;;  %3296 = vset.pattern.permute.xlu0 %v3416_v0  ;;  %v241_v3 = vld [vmem:[%s209_s9 + $0x20] sm:$0xff]  ;;  %v248_v4 = vpack.c.bf16 %v244_v2, %v242_v1  ;;  %v243_v5 = vld [vmem:[%s209_s9 + $0x30] sm:$0xff]  ;;  %v238_v6 = vld [vmem:[%s209_s9 + $0x8] sm:$0xff]  ;;  %s3417_s5 = smov 112   ;;  %s3418_s7 = smov 96  }
  0x2e   : > { %3297 = vset.pattern.permute.xlu1 %v3416_v0  ;;  %v240_v7 = vld [vmem:[%s209_s9 + $0x18] sm:$0xff]  ;;  %v247_v8 = vpack.c.bf16 %v243_v5, %v241_v3  ;;  %v237_v10 = vld [vmem:[%s209_s9] sm:$0xff]  ;;  %v239_v11 = vld [vmem:[%s209_s9 + $0x10] sm:$0xff]  ;;  %s3419_s8 = smov 80   ;;  %s3420_s9 = smov 64  }
  0x2f   : > { %v246_v9 = vpack.c.bf16 %v240_v7, %v238_v6  ;;  %350 = vmatprep.subr.bf16.mxu0 %v248_v4  ;;  %v245_v12 = vpack.c.bf16 %v239_v11, %v237_v10  ;;  %v257_v13 = vld [vmem:[%s4900_s2] sm:$0xff]  ;;  %v259_v15 = vld [vmem:[%s4900_s2 + $0x10] sm:$0xff]  ;;  %v258_v16 = vld [vmem:[%s4900_s2 + $0x8] sm:$0xff]  ;;  %s3421_s27 = smov 48   ;;  %s3422_s10 = smov 32  }
  0x30   : > { %351 = vmatpush1.bf16.msra.mxu0 %v247_v8  ;;  %v3298_v14 = vld [vmem:[%s4899_s1] sm:$0xff]   ;;  %267 = vperm.xlu0 %3296, %v257_v13   ;;  %v260_v17 = vld [vmem:[%s4900_s2 + $0x18] sm:$0xff]  ;;  %v262_v19 = vld [vmem:[%s4900_s2 + $0x28] sm:$0xff]  ;;  %s3423_s11 = smov 16   ;;  %s2902_s12 = sshll.u32 %s3535_s6, 9 }
  0x31   : > { %352 = vmatprep.subr.bf16.mxu0 %v246_v9  ;;  %277 = vperm.xlu1 %3297, %v259_v15   ;;  %v261_v18 = vld [vmem:[%s4900_s2 + $0x20] sm:$0xff]  ;;  %v3299_v20 = vld [vmem:[%s4899_s1 + $0x8] sm:$0xff]   ;;  %v263_v21 = vld [vmem:[%s4900_s2 + $0x30] sm:$0xff]  ;;  %s4008_s13 = scalar_lea.vmem [#allocation5], %s2902_s12  ;;  %s2982_s14 = sshll.u32 %s3403_s18, 13 }
  0x32   : > { %v264_v22 = vld [vmem:[%s4900_s2 + $0x38] sm:$0xff]  ;;  %v3300_v23 = vld [vmem:[%s4899_s1 + $0x10] sm:$0xff]   ;;  %v3586_v25 = vld [vmem:[%s4901_s3] sm:$0xff]   ;;  %s2806_s21 = sshll.u32 %s4008_s13, 4  ;;  %s4843_s26 = scalar_lea.hbm %s4902_s4, %s2982_s14  ;;  %s4847_s21 = int_to_ptr.vmem [resolvable:$true] %s2806_s21 }
  0x33   : > { %v3301_v24 = vld [vmem:[%s4899_s1 + $0x18] sm:$0xff]   ;;  %3063 = vmatprep.subr.bf16.mxu1 %v3586_v25  ;;  %s2791_s18 = scalar_lea.sflag [#allocation4], %s3535_s6  ;;  %s3331_s25 = scalar_lea.vmem %s4847_s21, 8192 }
  0x34   : > { %353 = vmatpush1.bf16.msra.mxu0 %v245_v12  ;;  %272 = vperm.xlu0 %3296, %v258_v16   ;;  %p3332_p8 = scmp.ne.s32.totalorder %s4847_s21, %s3331_s25 }
  0x35   : > { %282 = vperm.xlu1 %3297, %v260_v17   ;;  %3093 = vmatprep.subr.bf16.mxu0 %v3586_v25 }
  0x36   : > { %3064 = vmatpush3.bf16.msra.mxu1 %v3586_v25  ;;  %p3333_p12 = pnand %p3332_p8, %p3502_p9 }
  0x37   : > { %2907 = vmatmul.mubr.msk.bf16.vlgmr.msra.gmra.mxu0 %vm325_vm0, %v3298_v14  ;;  %3073 = vmatprep.subr.bf16.mxu1 %v3586_v25 }
  0x38   : > { %380 = vmatprep.mubr.bf16.mxu0 %v3416_v0  ;;  %287 = vperm.xlu0 %3296, %v261_v18   ;;  %p3334_p0 = pneg %p3333_p12 }
  0x39   : > { %292 = vperm.xlu1 %3297, %v262_v19   ;;  %3094 = vmatpush3.bf16.msra.mxu0 %v3586_v25 }
  0x3a   : > { %3113 = vmatprep.subr.bf16.mxu0 %v3586_v25 }
  0x3c   : > { %297 = vperm.xlu0 %3296, %v263_v21  }
  0x3d   : > { %302 = vperm.xlu1 %3297, %v264_v22  }
  0x3f   : > { %2908 = vmatmul.mubr.msk.bf16.gmra.mxu0 %vm325_vm0, %v3299_v20 }
  0x40   : > { %390 = vmatprep.mubr.bf16.mxu0 %v3416_v0 }
  0x47   : > { %2909 = vmatmul.mubr.msk.bf16.gmra.mxu0 %vm325_vm0, %v3300_v23 }
  0x48   : > { %400 = vmatprep.mubr.bf16.mxu0 %v3416_v0 }
  0x4f   : > { %2910 = vmatmul.mubr.msk.bf16.gmra.mxu0 %vm325_vm0, %v3301_v24 }
  0xab   : > { %v3594_v26 = vpop.permute.xlu0 %267 }
  0xac   : > { %v3602_v34 = vpop.permute.xlu1 %277 }
  0xaf   : > { %v3599_v30 = vpop.permute.xlu0 %272 }
  0xb0   : > { %v3609_v43 = vpop.permute.xlu1 %282 }
  0xb3   : > { %v288_v49 = vpop.permute.xlu0 %287 }
  0xb4   : > { %v293_v57 = vpop.permute.xlu1 %292 }
  0xb7   : > { %v3630_v1 = vpop.permute.xlu0 %297 }
  0xb8   : > { %v3642_v12 = vpop.permute.xlu1 %302 }
  0xf7   : > { %v372_v27 = vpop.f32.mrf.mxu0 }
  0xf8   : > { %v373_v28 = vadd.f32 %v372_v27, %v3594_v26 }
  0xf9   : > { %v3597_v29 = vpop.f32.mrf.mxu0 }
  0xfa   : > { %v427_v32 = vmul.f32 0.1, %v373_v28  ;;  %vm411_vm1 = vcmp.gt.f32.partialorder %v373_v28, 0.0  ;;  %v375_v15 = vadd.f32 %v3597_v29, %v3594_v26 }
  0xfb   : > { %v376_v31 = vpop.f32.mrf.mxu0 }
  0xfc   : > { %v377_v33 = vadd.f32 %v376_v31, %v3599_v30  ;;  %v443_v38 = vsel %vm411_vm1, %v373_v28, %v427_v32  ;;  %v428_v20 = vmul.f32 0.1, %v375_v15  ;;  %vm412_vm13 = vcmp.gt.f32.partialorder %v375_v15, 0.0 }
  0xfd   : > { %v378_v35 = vpop.f32.mrf.mxu0 }
  0xfe   : > { %vm413_vm2 = vcmp.gt.f32.partialorder %v377_v33, 0.0  ;;  %v429_v36 = vmul.f32 0.1, %v377_v33  ;;  %v379_v9 = vadd.f32 %v378_v35, %v3599_v30  ;;  %v444_v27 = vsel %vm412_vm13, %v375_v15, %v428_v20 }
  0xff   : > { %v382_v37 = vpop.f32.mrf.mxu0 }
 0x100   : > { %v445_v39 = vsel %vm413_vm2, %v377_v33, %v429_v36  ;;  %v383_v40 = vadd.f32 %v382_v37, %v3602_v34  ;;  %v430_v18 = vmul.f32 0.1, %v379_v9  ;;  %vm414_vm12 = vcmp.gt.f32.partialorder %v379_v9, 0.0 }
 0x101   : > { %v3605_v41 = vpack.c.bf16 %v445_v39, %v443_v38  ;;  %v3607_v42 = vpop.f32.mrf.mxu0 }
 0x102   : > { %v431_v45 = vmul.f32 0.1, %v383_v40  ;;  %vm415_vm4 = vcmp.gt.f32.partialorder %v383_v40, 0.0  ;;  %v446_v24 = vsel %vm414_vm12, %v379_v9, %v430_v18  ;;  %v385_v28 = vadd.f32 %v3607_v42, %v3602_v34 }
 0x103   : > { %v386_v44 = vpop.f32.mrf.mxu0  ;;  %557 = vrot.lane.b32.xlu0 %v3605_v41, %s3417_s5  ;;  %3065 = vmatprep.mubr.msk.bf16.mxu1 %vm475_vm3, %v3605_v41  ;;  %v3668_v29 = vpack.c.bf16 %v446_v24, %v444_v27 }
 0x104   : > { %v387_v46 = vadd.f32 %v386_v44, %v3609_v43  ;;  %v447_v51 = vsel %vm415_vm4, %v383_v40, %v431_v45  ;;  %v432_v31 = vmul.f32 0.1, %v385_v28  ;;  %vm416_vm15 = vcmp.gt.f32.partialorder %v385_v28, 0.0 }
 0x105   : > { %v3616_v47 = vpop.f32.mrf.mxu0  ;;  %vm2197_vm4 = vcmask 785408  }
 0x106   : > { %vm417_vm5 = vcmp.gt.f32.partialorder %v387_v46, 0.0  ;;  %v433_v48 = vmul.f32 0.1, %v387_v46  ;;  %v389_v26 = vadd.f32 %v3616_v47, %v3609_v43  ;;  %v448_v33 = vsel %vm416_vm15, %v385_v28, %v432_v31 }
 0x107   : > { %v392_v50 = vpop.f32.mrf.mxu0  ;;  %642 = vrot.lane.b32.xlu0 %v3605_v41, %s3418_s7 }
 0x108   : > { %v449_v52 = vsel %vm417_vm5, %v387_v46, %v433_v48  ;;  %v393_v53 = vadd.f32 %v392_v50, %v288_v49  ;;  %v434_v30 = vmul.f32 0.1, %v389_v26  ;;  %vm418_vm14 = vcmp.gt.f32.partialorder %v389_v26, 0.0 }
 0x109   : > { %v3620_v54 = vpack.c.bf16 %v449_v52, %v447_v51  ;;  %v394_v55 = vpop.f32.mrf.mxu0 }
 0x10a   : > { %v395_v56 = vadd.f32 %v394_v55, %v288_v49  ;;  %v435_v58 = vmul.f32 0.1, %v393_v53  ;;  %vm419_vm6 = vcmp.gt.f32.partialorder %v393_v53, 0.0  ;;  %v450_v32 = vsel %vm418_vm14, %v389_v26, %v434_v30 }
 0x10b   : > { %v396_v59 = vpop.f32.mrf.mxu0  ;;  %559 = vrot.lane.b32.xlu1 %v3620_v54, %s3417_s5  ;;  %727 = vrot.lane.b32.xlu0 %v3605_v41, %s3419_s8  ;;  %v3678_v34 = vpack.c.bf16 %v450_v32, %v448_v33 }
 0x10c   : > { %v397_v60 = vadd.f32 %v396_v59, %v293_v57  ;;  %3066 = vmatmul.mubr.msk.bf16.vlgmr.msra.gmra.mxu1 %vm475_vm3, %v3620_v54  ;;  %v436_v62 = vmul.f32 0.1, %v395_v56  ;;  %v451_v2 = vsel %vm419_vm6, %v393_v53, %v435_v58  ;;  %vm420_vm8 = vcmp.gt.f32.partialorder %v395_v56, 0.0 }
 0x10d   : > { %v398_v61 = vpop.f32.mrf.mxu0  ;;  %3074 = vmatpush3.bf16.msra.mxu1 %v3586_v25 }
 0x10e   : > { %vm421_vm7 = vcmp.gt.f32.partialorder %v397_v60, 0.0  ;;  %v437_v63 = vmul.f32 0.1, %v397_v60  ;;  %v399_v0 = vadd.f32 %v398_v61, %v293_v57  ;;  %3083 = vmatprep.subr.bf16.mxu1 %v3586_v25  ;;  %v452_v10 = vsel %vm420_vm8, %v395_v56, %v436_v62 }
 0x10f   : > { %v402_v3 = vpop.f32.mrf.mxu0  ;;  %644 = vrot.lane.b32.xlu1 %v3620_v54, %s3418_s7  ;;  %812 = vrot.lane.b32.xlu0 %v3605_v41, %s3420_s9 }
 0x110   : > { %v453_v4 = vsel %vm421_vm7, %v397_v60, %v437_v63  ;;  %vm422_vm9 = vcmp.gt.f32.partialorder %v399_v0, 0.0  ;;  %v438_v5 = vmul.f32 0.1, %v399_v0  ;;  %v403_v6 = vadd.f32 %v402_v3, %v3630_v1 }
 0x111   : > { %v3637_v7 = vpack.c.bf16 %v453_v4, %v451_v2  ;;  %v3639_v8 = vpop.f32.mrf.mxu0 }
 0x112   : > { %v454_v11 = vsel %vm422_vm9, %v399_v0, %v438_v5  ;;  %v439_v16 = vmul.f32 0.1, %v403_v6  ;;  %vm423_vm10 = vcmp.gt.f32.partialorder %v403_v6, 0.0  ;;  %v405_v37 = vadd.f32 %v3639_v8, %v3630_v1 }
 0x113   : > { %v3644_v13 = vpack.c.bf16 %v454_v11, %v452_v10  ;;  %v406_v14 = vpop.f32.mrf.mxu0  ;;  %729 = vrot.lane.b32.xlu1 %v3620_v54, %s3419_s8  ;;  %897 = vrot.lane.b32.xlu0 %v3605_v41, %s3421_s27 }
 0x114   : > { %v407_v17 = vadd.f32 %v406_v14, %v3642_v12  ;;  %3069 = vmatprep.mubr.msk.bf16.mxu1 %vm475_vm3, %v3637_v7  ;;  %v455_v21 = vsel %vm423_vm10, %v403_v6, %v439_v16  ;;  %v440_v39 = vmul.f32 0.1, %v405_v37  ;;  %vm424_vm2 = vcmp.gt.f32.partialorder %v405_v37, 0.0 }
 0x115   : > { %v408_v35 = vpop.f32.mrf.mxu0 }
 0x116   : > { %vm425_vm11 = vcmp.gt.f32.partialorder %v407_v17, 0.0  ;;  %v441_v19 = vmul.f32 0.1, %v407_v17  ;;  %v409_v36 = vadd.f32 %v408_v35, %v3642_v12 }
 0x117   : > { %814 = vrot.lane.b32.xlu1 %v3620_v54, %s3420_s9  ;;  %982 = vrot.lane.b32.xlu0 %v3605_v41, %s3422_s10 }
 0x118   : > { %v457_v22 = vsel %vm425_vm11, %v407_v17, %v441_v19  ;;  %v442_v38 = vmul.f32 0.1, %v409_v36  ;;  %vm426_vm1 = vcmp.gt.f32.partialorder %v409_v36, 0.0 }
 0x119   : > { %v465_v23 = vpack.c.bf16 %v457_v22, %v455_v21 }
 0x11a   : > { %v458_v40 = vsel %vm426_vm1, %v409_v36, %v442_v38 }
 0x11b   : > { %899 = vrot.lane.b32.xlu1 %v3620_v54, %s3421_s27  ;;  %1067 = vrot.lane.b32.xlu0 %v3605_v41, %s3423_s11  ;;  %v456_v41 = vsel %vm424_vm2, %v405_v37, %v440_v39 }
 0x11c   : > { %3070 = vmatmul.mubr.msk.bf16.gmra.mxu1 %vm475_vm3, %v465_v23  ;;  %v3732_v42 = vpack.c.bf16 %v458_v40, %v456_v41 }
 0x11f   : > { %984 = vrot.lane.b32.xlu1 %v3620_v54, %s3422_s10  ;;  %1233 = vrot.lane.b32.xlu0 %v3668_v29, %s3417_s5 }
 0x123   : > { %1069 = vrot.lane.b32.xlu1 %v3620_v54, %s3423_s11  ;;  %1318 = vrot.lane.b32.xlu0 %v3668_v29, %s3418_s7 }
 0x127   : > { %1235 = vrot.lane.b32.xlu1 %v3678_v34, %s3417_s5  ;;  %1403 = vrot.lane.b32.xlu0 %v3668_v29, %s3419_s8 }
 0x12b   : > { %1320 = vrot.lane.b32.xlu1 %v3678_v34, %s3418_s7  ;;  %1488 = vrot.lane.b32.xlu0 %v3668_v29, %s3420_s9 }
 0x12f   : > { %1405 = vrot.lane.b32.xlu1 %v3678_v34, %s3419_s8  ;;  %1573 = vrot.lane.b32.xlu0 %v3668_v29, %s3421_s27 }
 0x133   : > { %1490 = vrot.lane.b32.xlu1 %v3678_v34, %s3420_s9  ;;  %1658 = vrot.lane.b32.xlu0 %v3668_v29, %s3422_s10 }
 0x137   : > { %1575 = vrot.lane.b32.xlu1 %v3678_v34, %s3421_s27  ;;  %1743 = vrot.lane.b32.xlu0 %v3668_v29, %s3423_s11 }
 0x13b   : > { %1660 = vrot.lane.b32.xlu1 %v3678_v34, %s3422_s10  ;;  %561 = vrot.lane.b32.xlu0 %v3637_v7, %s3417_s5 }
 0x13f   : > { %1745 = vrot.lane.b32.xlu1 %v3678_v34, %s3423_s11  ;;  %646 = vrot.lane.b32.xlu0 %v3637_v7, %s3418_s7 }
 0x143   : > { %563 = vrot.lane.b32.xlu1 %v465_v23, %s3417_s5  ;;  %731 = vrot.lane.b32.xlu0 %v3637_v7, %s3419_s8 }
 0x147   : > { %648 = vrot.lane.b32.xlu1 %v465_v23, %s3418_s7  ;;  %816 = vrot.lane.b32.xlu0 %v3637_v7, %s3420_s9 }
 0x14b   : > { %733 = vrot.lane.b32.xlu1 %v465_v23, %s3419_s8  ;;  %901 = vrot.lane.b32.xlu0 %v3637_v7, %s3421_s27 }
 0x14f   : > { %818 = vrot.lane.b32.xlu1 %v465_v23, %s3420_s9  ;;  %986 = vrot.lane.b32.xlu0 %v3637_v7, %s3422_s10 }
 0x153   : > { %903 = vrot.lane.b32.xlu1 %v465_v23, %s3421_s27  ;;  %1071 = vrot.lane.b32.xlu0 %v3637_v7, %s3423_s11 }
 0x157   : > { %988 = vrot.lane.b32.xlu1 %v465_v23, %s3422_s10  ;;  %1237 = vrot.lane.b32.xlu0 %v3644_v13, %s3417_s5 }
 0x15b   : > { %1073 = vrot.lane.b32.xlu1 %v465_v23, %s3423_s11  ;;  %1322 = vrot.lane.b32.xlu0 %v3644_v13, %s3418_s7 }
 0x15f   : > { %1239 = vrot.lane.b32.xlu1 %v3732_v42, %s3417_s5  ;;  %1407 = vrot.lane.b32.xlu0 %v3644_v13, %s3419_s8  ;;  %s3424_s5 = smov [#allocation5]  }
 0x163   : > { %1324 = vrot.lane.b32.xlu1 %v3732_v42, %s3418_s7  ;;  %1492 = vrot.lane.b32.xlu0 %v3644_v13, %s3420_s9 }
 0x167   : > { %1409 = vrot.lane.b32.xlu1 %v3732_v42, %s3419_s8  ;;  %1577 = vrot.lane.b32.xlu0 %v3644_v13, %s3421_s27 }
 0x16b   : > { %1494 = vrot.lane.b32.xlu1 %v3732_v42, %s3420_s9  ;;  %1662 = vrot.lane.b32.xlu0 %v3644_v13, %s3422_s10 }
 0x16f   : > { %1579 = vrot.lane.b32.xlu1 %v3732_v42, %s3421_s27  ;;  %1747 = vrot.lane.b32.xlu0 %v3644_v13, %s3423_s11 }
 0x173   : > { %1664 = vrot.lane.b32.xlu1 %v3732_v42, %s3422_s10 }
 0x175   : > { %v558_v43 = vpop.permute.xlu0 %557 }
 0x176   : > { %3075 = vmatprep.mubr.msk.bf16.mxu1 %vm475_vm3, %v558_v43 }
 0x177   : > { %1749 = vrot.lane.b32.xlu1 %v3732_v42, %s3423_s11 }
 0x179   : > { %v643_v44 = vpop.permute.xlu0 %642 }
 0x17d   : > { %v560_v45 = vpop.permute.xlu1 %559  ;;  %v728_v46 = vpop.permute.xlu0 %727 }
 0x17e   : > { %3076 = vmatmul.mubr.msk.bf16.vlgmr.msra.gmra.mxu1 %vm475_vm3, %v560_v45  ;;  %3095 = vmatprep.mubr.msk.bf16.mxu0 %vm475_vm3, %v728_v46 }
 0x17f   : > { %3084 = vmatpush3.bf16.msra.mxu1 %v3586_v25 }
 0x180   : > { %3103 = vmatprep.subr.bf16.mxu1 %v3586_v25 }
 0x181   : > { %v645_v47 = vpop.permute.xlu1 %644  ;;  %v813_v48 = vpop.permute.xlu0 %812 }
 0x185   : > { %v730_v49 = vpop.permute.xlu1 %729  ;;  %v898_v50 = vpop.permute.xlu0 %897 }
 0x186   : > { %3096 = vmatmul.mubr.msk.bf16.vlgmr.msra.gmra.mxu0 %vm475_vm3, %v730_v49 }
 0x187   : > { %3114 = vmatpush3.bf16.msra.mxu0 %v3586_v25 }
 0x188   : > { %3133 = vmatprep.subr.bf16.mxu0 %v3586_v25 }
 0x189   : > { %v815_v51 = vpop.permute.xlu1 %814  ;;  %v3766_v52 = vpop.permute.xlu0 %982 }
 0x18d   : > { %v900_v53 = vpop.permute.xlu1 %899  ;;  %v1068_v54 = vpop.permute.xlu0 %1067 }
 0x191   : > { %v3768_v55 = vpop.permute.xlu1 %984  ;;  %v3770_v56 = vpop.permute.xlu0 %1233 }
 0x195   : > { %v1070_v57 = vpop.permute.xlu1 %1069  ;;  %v3772_v58 = vpop.permute.xlu0 %1318 }
 0x199   : > { %v3774_v59 = vpop.permute.xlu1 %1235  ;;  %v3776_v60 = vpop.permute.xlu0 %1403 }
 0x19d   : > { %v3778_v61 = vpop.permute.xlu1 %1320  ;;  %v3780_v62 = vpop.permute.xlu0 %1488 }
 0x1a1   : > { %v3782_v63 = vpop.permute.xlu1 %1405  ;;  %v3784_v0 = vpop.permute.xlu0 %1573 }
 0x1a5   : > { %v3786_v1 = vpop.permute.xlu1 %1490  ;;  %v3788_v2 = vpop.permute.xlu0 %1658 }
 0x1a9   : > { %v3790_v3 = vpop.permute.xlu1 %1575  ;;  %v3792_v4 = vpop.permute.xlu0 %1743 }
 0x1ad   : > { %v3794_v5 = vpop.permute.xlu1 %1660  ;;  %v562_v6 = vpop.permute.xlu0 %561 }
 0x1ae   : > { %3079 = vmatprep.mubr.msk.bf16.mxu1 %vm475_vm3, %v562_v6 }
 0x1b1   : > { %v3797_v7 = vpop.permute.xlu1 %1745  ;;  %v647_v8 = vpop.permute.xlu0 %646 }
 0x1b5   : > { %v564_v9 = vpop.permute.xlu1 %563  ;;  %v732_v10 = vpop.permute.xlu0 %731 }
 0x1b6   : > { %3080 = vmatmul.mubr.msk.bf16.gmra.mxu1 %vm475_vm3, %v564_v9  ;;  %3099 = vmatprep.mubr.msk.bf16.mxu0 %vm475_vm3, %v732_v10 }
 0x1b7   : > { %3085 = vmatprep.mubr.msk.bf16.mxu1 %vm475_vm3, %v643_v44 }
 0x1b9   : > { %v649_v11 = vpop.permute.xlu1 %648  ;;  %v817_v14 = vpop.permute.xlu0 %816 }
 0x1bd   : > { %v734_v12 = vpop.permute.xlu1 %733  ;;  %v902_v15 = vpop.permute.xlu0 %901 }
 0x1be   : > { %3086 = vmatmul.mubr.msk.bf16.vlgmr.msra.gmra.mxu1 %vm475_vm3, %v645_v47  ;;  %3100 = vmatmul.mubr.msk.bf16.gmra.mxu0 %vm475_vm3, %v734_v12 }
 0x1bf   : > { %3089 = vmatprep.mubr.msk.bf16.mxu1 %vm475_vm3, %v647_v8  ;;  %3115 = vmatprep.mubr.msk.bf16.mxu0 %vm475_vm3, %v898_v50 }
 0x1c0   : > { %3104 = vmatpush3.bf16.msra.mxu1 %v3586_v25 }
 0x1c1   : > { %3123 = vmatprep.subr.bf16.mxu1 %v3586_v25  ;;  %v819_v16 = vpop.permute.xlu1 %818  ;;  %v987_v20 = vpop.permute.xlu0 %986 }
 0x1c5   : > { %v904_v18 = vpop.permute.xlu1 %903  ;;  %v1072_v23 = vpop.permute.xlu0 %1071 }
 0x1c6   : > { %3090 = vmatmul.mubr.msk.bf16.gmra.mxu1 %vm475_vm3, %v649_v11  ;;  %3116 = vmatmul.mubr.msk.bf16.vlgmr.msra.gmra.mxu0 %vm475_vm3, %v900_v53 }
 0x1c7   : > { %3105 = vmatprep.mubr.msk.bf16.mxu1 %vm475_vm3, %v813_v48  ;;  %3119 = vmatprep.mubr.msk.bf16.mxu0 %vm475_vm3, %v902_v15 }
 0x1c8   : > { %3134 = vmatpush3.bf16.msra.mxu0 %v3586_v25 }
 0x1c9   : > { %3153 = vmatprep.subr.bf16.mxu0 %v3586_v25  ;;  %v989_v24 = vpop.permute.xlu1 %988  ;;  %v1238_v32 = vpop.permute.xlu0 %1237 }
 0x1cc   : > { %v3814_v17 = vpop.f32.mrf.mxu1 }
 0x1cd   : > { %1840 = vrot.lane.b32.xlu0 %v3814_v17, %s3422_s10  ;;  %v1074_v27 = vpop.permute.xlu1 %1073  ;;  %v1323_v35 = vpop.permute.xlu0 %1322 }
 0x1ce   : > { %v3818_v19 = vpop.f32.mrf.mxu1  ;;  %3106 = vmatmul.mubr.msk.bf16.vlgmr.msra.gmra.mxu1 %vm475_vm3, %v815_v51  ;;  %3120 = vmatmul.mubr.msk.bf16.gmra.mxu0 %vm475_vm3, %v904_v18 }
 0x1cf   : > { %3109 = vmatprep.mubr.msk.bf16.mxu1 %vm475_vm3, %v817_v14  ;;  %3135 = vmatprep.mubr.msk.bf16.mxu0 %vm475_vm3, %v1068_v54 }
 0x1d0   : > { %v3824_v21 = vpop.f32.mrf.mxu1  ;;  %3124 = vmatpush3.bf16.msra.mxu1 %v3586_v25 }
 0x1d1   : > { %1836 = vrot.lane.b32.xlu0 %v3818_v19, %s3422_s10  ;;  %1842 = vrot.lane.b32.xlu1 %v3824_v21, %s3422_s10  ;;  %v1240_v33 = vpop.permute.xlu1 %1239 }
 0x1d2   : > { %3143 = vmatprep.subr.bf16.mxu1 %v3586_v25  ;;  %v3832_v22 = vpop.f32.mrf.mxu1 }
 0x1d5   : > { %1838 = vrot.lane.b32.xlu1 %v3832_v22, %s3422_s10 }
 0x1d6   : > { %3110 = vmatmul.mubr.msk.bf16.gmra.mxu1 %vm475_vm3, %v819_v16  ;;  %3136 = vmatmul.mubr.msk.bf16.vlgmr.msra.gmra.mxu0 %vm475_vm3, %v1070_v57 }
 0x1d7   : > { %3125 = vmatprep.mubr.msk.bf16.mxu1 %vm475_vm3, %v3766_v52  ;;  %3139 = vmatprep.mubr.msk.bf16.mxu0 %vm475_vm3, %v1072_v23 }
 0x1d8   : > { %3154 = vmatpush3.bf16.msra.mxu0 %v3586_v25 }
 0x1d9   : > { %3173 = vmatprep.subr.bf16.mxu0 %v3586_v25 }
 0x1dc   : > { %v3843_v26 = vpop.f32.mrf.mxu1 }
 0x1dd   : > { %1848 = vrot.lane.b32.xlu0 %v3843_v26, %s3422_s10 }
 0x1de   : > { %v3847_v28 = vpop.f32.mrf.mxu1  ;;  %3126 = vmatmul.mubr.msk.bf16.vlgmr.msra.gmra.mxu1 %vm475_vm3, %v3768_v55  ;;  %3140 = vmatmul.mubr.msk.bf16.gmra.mxu0 %vm475_vm3, %v1074_v27 }
 0x1df   : > { %3129 = vmatprep.mubr.msk.bf16.mxu1 %vm475_vm3, %v987_v20  ;;  %3155 = vmatprep.mubr.msk.bf16.mxu0 %vm475_vm3, %v3770_v56 }
 0x1e0   : > { %v3855_v30 = vpop.f32.mrf.mxu1  ;;  %3144 = vmatpush3.bf16.msra.mxu1 %v3586_v25 }
 0x1e1   : > { %1844 = vrot.lane.b32.xlu0 %v3847_v28, %s3422_s10  ;;  %1850 = vrot.lane.b32.xlu1 %v3855_v30, %s3422_s10 }
 0x1e2   : > { %3163 = vmatprep.subr.bf16.mxu1 %v3586_v25  ;;  %v3863_v31 = vpop.f32.mrf.mxu1 }
 0x1e5   : > { %1846 = vrot.lane.b32.xlu1 %v3863_v31, %s3422_s10 }
 0x1e6   : > { %3130 = vmatmul.mubr.msk.bf16.gmra.mxu1 %vm475_vm3, %v989_v24  ;;  %3156 = vmatmul.mubr.msk.bf16.vlgmr.msra.gmra.mxu0 %vm475_vm3, %v3774_v59 }
 0x1e7   : > { %3145 = vmatprep.mubr.msk.bf16.mxu1 %vm475_vm3, %v3668_v29  ;;  %3159 = vmatprep.mubr.msk.bf16.mxu0 %vm475_vm3, %v1238_v32  ;;  %v1408_v29 = vpop.permute.xlu0 %1407 }
 0x1e8   : > { %3174 = vmatpush3.bf16.msra.mxu0 %v3586_v25 }
 0x1e9   : > { %3193 = vmatprep.subr.bf16.mxu0 %v3586_v25 }
 0x1eb   : > { %v1493_v36 = vpop.permute.xlu0 %1492 }
 0x1ee   : > { %3146 = vmatmul.mubr.msk.bf16.vlgmr.msra.gmra.mxu1 %vm475_vm3, %v3678_v34  ;;  %3160 = vmatmul.mubr.msk.bf16.gmra.mxu0 %vm475_vm3, %v1240_v33  ;;  %v1325_v34 = vpop.permute.xlu1 %1324 }
 0x1ef   : > { %3149 = vmatprep.mubr.msk.bf16.mxu1 %vm475_vm3, %v3644_v13  ;;  %3175 = vmatprep.mubr.msk.bf16.mxu0 %vm475_vm3, %v3776_v60  ;;  %v1578_v37 = vpop.permute.xlu0 %1577 }
 0x1f0   : > { %3164 = vmatpush3.bf16.msra.mxu1 %v3586_v25 }
 0x1f1   : > { %3183 = vmatprep.subr.bf16.mxu1 %v3586_v25 }
 0x1f2   : > { %v1410_v13 = vpop.permute.xlu1 %1409 }
 0x1f3   : > { %v1663_v40 = vpop.permute.xlu0 %1662 }
 0x1f6   : > { %3150 = vmatmul.mubr.msk.bf16.gmra.mxu1 %vm475_vm3, %v3732_v42  ;;  %3176 = vmatmul.mubr.msk.bf16.vlgmr.msra.gmra.mxu0 %vm475_vm3, %v3782_v63  ;;  %v1495_v38 = vpop.permute.xlu1 %1494 }
 0x1f7   : > { %3165 = vmatprep.mubr.msk.bf16.mxu1 %vm475_vm3, %v3772_v58  ;;  %3179 = vmatprep.mubr.msk.bf16.mxu0 %vm475_vm3, %v1408_v29  ;;  %v1748_v41 = vpop.permute.xlu0 %1747 }
 0x1f8   : > { %3194 = vmatpush3.bf16.msra.mxu0 %v3586_v25 }
 0x1f9   : > { %3213 = vmatprep.subr.bf16.mxu0 %v3586_v25 }
 0x1fa   : > { %v1580_v39 = vpop.permute.xlu1 %1579 }
 0x1fe   : > { %3166 = vmatmul.mubr.msk.bf16.vlgmr.msra.gmra.mxu1 %vm475_vm3, %v3778_v61  ;;  %3180 = vmatmul.mubr.msk.bf16.gmra.mxu0 %vm475_vm3, %v1410_v13  ;;  %v1665_v42 = vpop.permute.xlu1 %1664 }
 0x1ff   : > { %3169 = vmatprep.mubr.msk.bf16.mxu1 %vm475_vm3, %v1323_v35  ;;  %3195 = vmatprep.mubr.msk.bf16.mxu0 %vm475_vm3, %v3784_v0 }
 0x200   : > { %3184 = vmatpush3.bf16.msra.mxu1 %v3586_v25 }
 0x201   : > { %3203 = vmatprep.subr.bf16.mxu1 %v3586_v25 }
 0x202   : > { %v1750_v43 = vpop.permute.xlu1 %1749 }
 0x206   : > { %3170 = vmatmul.mubr.msk.bf16.gmra.mxu1 %vm475_vm3, %v1325_v34  ;;  %3196 = vmatmul.mubr.msk.bf16.vlgmr.msra.gmra.mxu0 %vm475_vm3, %v3790_v3 }
 0x207   : > { %3185 = vmatprep.mubr.msk.bf16.mxu1 %vm475_vm3, %v3780_v62  ;;  %3199 = vmatprep.mubr.msk.bf16.mxu0 %vm475_vm3, %v1578_v37 }
 0x208   : > { %3214 = vmatpush3.bf16.msra.mxu0 %v3586_v25 }
 0x20e   : > { %3186 = vmatmul.mubr.msk.bf16.vlgmr.msra.gmra.mxu1 %vm475_vm3, %v3786_v1  ;;  %3200 = vmatmul.mubr.msk.bf16.gmra.mxu0 %vm475_vm3, %v1580_v39 }
 0x20f   : > { %3189 = vmatprep.mubr.msk.bf16.mxu1 %vm475_vm3, %v1493_v36  ;;  %3215 = vmatprep.mubr.msk.bf16.mxu0 %vm475_vm3, %v3792_v4 }
 0x210   : > { %3204 = vmatpush3.bf16.msra.mxu1 %v3586_v25 }
 0x216   : > { %3190 = vmatmul.mubr.msk.bf16.gmra.mxu1 %vm475_vm3, %v1495_v38  ;;  %3216 = vmatmul.mubr.msk.bf16.vlgmr.msra.gmra.mxu0 %vm475_vm3, %v3797_v7 }
 0x217   : > { %3205 = vmatprep.mubr.msk.bf16.mxu1 %vm475_vm3, %v3788_v2  ;;  %3219 = vmatprep.mubr.msk.bf16.mxu0 %vm475_vm3, %v1748_v41 }
 0x21e   : > { %3206 = vmatmul.mubr.msk.bf16.vlgmr.msra.gmra.mxu1 %vm475_vm3, %v3794_v5  ;;  %3220 = vmatmul.mubr.msk.bf16.gmra.mxu0 %vm475_vm3, %v1750_v43 }
 0x21f   : > { %3209 = vmatprep.mubr.msk.bf16.mxu1 %vm475_vm3, %v1663_v40 }
 0x226   : > { %3210 = vmatmul.mubr.msk.bf16.gmra.mxu1 %vm475_vm3, %v1665_v42  ;;  %vm2188_vm3 = vcmask 523264  }
 0x23e   : > { %v3077_v25 = vpop.f32.mrf.mxu1 }
 0x23f   : > { %1872 = vrot.lane.b32.xlu0 %v3077_v25, %s3420_s9  ;;  %v1841_v0 = vpop.permute.xlu0 %1840 }
 0x240   : > { %v611_v44 = vpop.f32.mrf.mxu1  ;;  %v2182_v20 = vsel %vm325_vm0, %v3814_v17, %v1841_v0 }
 0x242   : > { %v3078_v45 = vpop.f32.mrf.mxu1 }
 0x243   : > { %1896 = vrot.lane.b32.xlu0 %v3077_v25, %s3418_s7  ;;  %1874 = vrot.lane.b32.xlu1 %v3078_v45, %s3420_s9  ;;  %v1843_v2 = vpop.permute.xlu1 %1842  ;;  %v1837_v3 = vpop.permute.xlu0 %1836 }
 0x244   : > { %v614_v49 = vpop.f32.mrf.mxu1  ;;  %v2183_v35 = vsel %vm325_vm0, %v3824_v21, %v1843_v2  ;;  %v2180_v42 = vsel %vm325_vm0, %v3818_v19, %v1837_v3 }
 0x246   : > { %v3097_v46 = vpop.f32.mrf.mxu0 }
 0x247   : > { %1960 = vrot.lane.b32.xlu0 %v3097_v46, %s3420_s9  ;;  %1898 = vrot.lane.b32.xlu1 %v3078_v45, %s3418_s7  ;;  %v3976_v5 = vpop.permute.xlu1 %1838 }
 0x248   : > { %v781_v47 = vpop.f32.mrf.mxu0  ;;  %v2181_v19 = vsel %vm325_vm0, %v3832_v22, %v3976_v5 }
 0x24a   : > { %v3098_v48 = vpop.f32.mrf.mxu0 }
 0x24b   : > { %1984 = vrot.lane.b32.xlu0 %v3097_v46, %s3418_s7  ;;  %1962 = vrot.lane.b32.xlu1 %v3098_v48, %s3420_s9 }
 0x24c   : > { %v784_v50 = vpop.f32.mrf.mxu0 }
 0x24f   : > { %1868 = vrot.lane.b32.xlu0 %v611_v44, %s3420_s9  ;;  %1986 = vrot.lane.b32.xlu1 %v3098_v48, %s3418_s7  ;;  %v3978_v6 = vpop.permute.xlu0 %1848 }
 0x253   : > { %1892 = vrot.lane.b32.xlu0 %v611_v44, %s3418_s7  ;;  %1870 = vrot.lane.b32.xlu1 %v614_v49, %s3420_s9  ;;  %v3985_v9 = vpop.permute.xlu1 %1850  ;;  %v3989_v10 = vpop.permute.xlu0 %1844 }
 0x257   : > { %1956 = vrot.lane.b32.xlu0 %v781_v47, %s3420_s9  ;;  %1894 = vrot.lane.b32.xlu1 %v614_v49, %s3418_s7  ;;  %v3996_v14 = vpop.permute.xlu1 %1846 }
 0x25b   : > { %1980 = vrot.lane.b32.xlu0 %v781_v47, %s3418_s7  ;;  %1958 = vrot.lane.b32.xlu1 %v784_v50, %s3420_s9 }
 0x25f   : > { %1982 = vrot.lane.b32.xlu1 %v784_v50, %s3418_s7 }
 0x276   : > { %v3081_v51 = vpop.f32.mrf.mxu1 }
 0x277   : > { %1880 = vrot.lane.b32.xlu0 %v3081_v51, %s3420_s9 }
 0x278   : > { %v627_v52 = vpop.f32.mrf.mxu1 }
 0x27a   : > { %v3082_v53 = vpop.f32.mrf.mxu1 }
 0x27b   : > { %1904 = vrot.lane.b32.xlu0 %v3081_v51, %s3418_s7  ;;  %1882 = vrot.lane.b32.xlu1 %v3082_v53, %s3420_s9 }
 0x27c   : > { %v630_v57 = vpop.f32.mrf.mxu1 }
 0x27e   : > { %v3101_v54 = vpop.f32.mrf.mxu0  ;;  %v3955_v58 = vpop.f32.mrf.mxu1 }
 0x27f   : > { %1968 = vrot.lane.b32.xlu0 %v3101_v54, %s3420_s9  ;;  %1906 = vrot.lane.b32.xlu1 %v3082_v53, %s3418_s7 }
 0x280   : > { %v797_v55 = vpop.f32.mrf.mxu0  ;;  %v3959_v60 = vpop.f32.mrf.mxu1 }
 0x282   : > { %v3102_v56 = vpop.f32.mrf.mxu0  ;;  %v3964_v62 = vpop.f32.mrf.mxu1 }
 0x283   : > { %1992 = vrot.lane.b32.xlu0 %v3101_v54, %s3418_s7  ;;  %1970 = vrot.lane.b32.xlu1 %v3102_v56, %s3420_s9 }
 0x284   : > { %v800_v59 = vpop.f32.mrf.mxu0  ;;  %v3974_v4 = vpop.f32.mrf.mxu1 }
 0x286   : > { %v3117_v61 = vpop.f32.mrf.mxu0  ;;  %v3983_v7 = vpop.f32.mrf.mxu1 }
 0x287   : > { %1876 = vrot.lane.b32.xlu0 %v627_v52, %s3420_s9  ;;  %1994 = vrot.lane.b32.xlu1 %v3102_v56, %s3418_s7 }
 0x288   : > { %v951_v63 = vpop.f32.mrf.mxu0  ;;  %v3991_v11 = vpop.f32.mrf.mxu1 }
 0x28a   : > { %v3118_v1 = vpop.f32.mrf.mxu0  ;;  %v3999_v16 = vpop.f32.mrf.mxu1 }
 0x28b   : > { %1900 = vrot.lane.b32.xlu0 %v627_v52, %s3418_s7  ;;  %1878 = vrot.lane.b32.xlu1 %v630_v57, %s3420_s9 }
 0x28c   : > { %v954_v8 = vpop.f32.mrf.mxu0  ;;  %v4027_v38 = vpop.f32.mrf.mxu1 }
 0x28e   : > { %v3121_v12 = vpop.f32.mrf.mxu0  ;;  %v4034_v40 = vpop.f32.mrf.mxu1 }
 0x28f   : > { %1964 = vrot.lane.b32.xlu0 %v797_v55, %s3420_s9  ;;  %1902 = vrot.lane.b32.xlu1 %v630_v57, %s3418_s7 }
 0x290   : > { %v967_v18 = vpop.f32.mrf.mxu0  ;;  %v4041_v45 = vpop.f32.mrf.mxu1 }
 0x292   : > { %v3122_v32 = vpop.f32.mrf.mxu0  ;;  %v4052_v50 = vpop.f32.mrf.mxu1 }
 0x293   : > { %1988 = vrot.lane.b32.xlu0 %v797_v55, %s3418_s7  ;;  %1966 = vrot.lane.b32.xlu1 %v800_v59, %s3420_s9 }
 0x294   : > { %v970_v41 = vpop.f32.mrf.mxu0  ;;  %v4064_v22 = vpop.f32.mrf.mxu1 }
 0x296   : > { %v3137_v46 = vpop.f32.mrf.mxu0  ;;  %v4069_v54 = vpop.f32.mrf.mxu1 }
 0x297   : > { %1990 = vrot.lane.b32.xlu1 %v800_v59, %s3418_s7  ;;  %1928 = vrot.lane.b32.xlu0 %v3955_v58, %s3422_s10 }
 0x298   : > { %v1121_v51 = vpop.f32.mrf.mxu0  ;;  %v4073_v56 = vpop.f32.mrf.mxu1 }
 0x29a   : > { %v3138_v53 = vpop.f32.mrf.mxu0 }
 0x29b   : > { %2048 = vrot.lane.b32.xlu0 %v3117_v61, %s3420_s9  ;;  %1930 = vrot.lane.b32.xlu1 %v3964_v62, %s3422_s10 }
 0x29c   : > { %v1124_v55 = vpop.f32.mrf.mxu0 }
 0x29e   : > { %v3141_v57 = vpop.f32.mrf.mxu0 }
 0x29f   : > { %2072 = vrot.lane.b32.xlu0 %v3117_v61, %s3418_s7  ;;  %2050 = vrot.lane.b32.xlu1 %v3118_v1, %s3420_s9  ;;  %v4080_v61 = vpop.f32.mrf.mxu1 }
 0x2a3   : > { %1924 = vrot.lane.b32.xlu0 %v3959_v60, %s3422_s10  ;;  %2074 = vrot.lane.b32.xlu1 %v3118_v1, %s3418_s7 }
 0x2a7   : > { %2044 = vrot.lane.b32.xlu0 %v951_v63, %s3420_s9  ;;  %1926 = vrot.lane.b32.xlu1 %v3974_v4, %s3422_s10 }
 0x2ab   : > { %2068 = vrot.lane.b32.xlu0 %v951_v63, %s3418_s7  ;;  %2046 = vrot.lane.b32.xlu1 %v954_v8, %s3420_s9  ;;  %v1137_v63 = vpop.f32.mrf.mxu0 }
 0x2ad   : > { %v3142_v2 = vpop.f32.mrf.mxu0 }
 0x2af   : > { %2070 = vrot.lane.b32.xlu1 %v954_v8, %s3418_s7  ;;  %1936 = vrot.lane.b32.xlu0 %v3983_v7, %s3422_s10  ;;  %v2186_v8 = vsel %vm325_vm0, %v3843_v26, %v3978_v6 }
 0x2b1   : > { %v1873_v15 = vpop.permute.xlu0 %1872 }
 0x2b2   : > { %v2191_v23 = vsel %vm2188_vm3, %v2182_v20, %v1873_v15  ;;  %v4100_v20 = vpop.f32.mrf.mxu1 }
 0x2b3   : > { %2056 = vrot.lane.b32.xlu0 %v3121_v12, %s3420_s9  ;;  %1938 = vrot.lane.b32.xlu1 %v3999_v16, %s3422_s10 }
 0x2b5   : > { %v1897_v24 = vpop.permute.xlu0 %1896  ;;  %v1875_v27 = vpop.permute.xlu1 %1874 }
 0x2b6   : > { %v2200_v33 = vsel %vm2197_vm4, %v2191_v23, %v1897_v24  ;;  %v2192_v17 = vsel %vm2188_vm3, %v2183_v35, %v1875_v27  ;;  %v2187_v24 = vsel %vm325_vm0, %v3855_v30, %v3985_v9 }
 0x2b7   : > { %2742 = vst [vmem:[%s4008_s13 + $0x80] sm:$0xff] %v2200_v33  ;;  %2080 = vrot.lane.b32.xlu0 %v3121_v12, %s3418_s7  ;;  %2058 = vrot.lane.b32.xlu1 %v3122_v32, %s3420_s9  ;;  %v1140_v33 = vpop.f32.mrf.mxu0 }
 0x2b9   : > { %v4016_v29 = vpop.permute.xlu0 %1960  ;;  %v1899_v34 = vpop.permute.xlu1 %1898 }
 0x2ba   : > { %v2201_v13 = vsel %vm2197_vm4, %v2192_v17, %v1899_v34  ;;  %v3157_v9 = vpop.f32.mrf.mxu0 }
 0x2bb   : > { %2750 = vst [vmem:[%s4008_s13 + $0xc0] sm:$0xff] %v2201_v13  ;;  %1932 = vrot.lane.b32.xlu0 %v3991_v11, %s3422_s10  ;;  %2082 = vrot.lane.b32.xlu1 %v3122_v32, %s3418_s7  ;;  %v4113_v32 = vpop.f32.mrf.mxu1 }
 0x2bd   : > { %v4023_v36 = vpop.permute.xlu0 %1984  ;;  %v4025_v37 = vpop.permute.xlu1 %1962 }
 0x2be   : > { %v4123_v30 = vpop.f32.mrf.mxu1 }
 0x2bf   : > { %2052 = vrot.lane.b32.xlu0 %v967_v18, %s3420_s9  ;;  %1934 = vrot.lane.b32.xlu1 %v4027_v38, %s3422_s10 }
 0x2c1   : > { %v1869_v21 = vpop.permute.xlu0 %1868  ;;  %v4032_v39 = vpop.permute.xlu1 %1986 }
 0x2c2   : > { %v2189_v43 = vsel %vm2188_vm3, %v2180_v42, %v1869_v21  ;;  %v1287_v42 = vpop.f32.mrf.mxu0 }
 0x2c3   : > { %2076 = vrot.lane.b32.xlu0 %v967_v18, %s3418_s7  ;;  %2054 = vrot.lane.b32.xlu1 %v970_v41, %s3420_s9 }
 0x2c5   : > { %v1893_v25 = vpop.permute.xlu0 %1892  ;;  %v1871_v44 = vpop.permute.xlu1 %1870 }
 0x2c6   : > { %v2198_v47 = vsel %vm2197_vm4, %v2189_v43, %v1893_v25  ;;  %v2190_v48 = vsel %vm2188_vm3, %v2181_v19, %v1871_v44  ;;  %v2184_v43 = vsel %vm325_vm0, %v3847_v28, %v3989_v10 }
 0x2c7   : > { %2726 = vst [vmem:[%s4008_s13] sm:$0xff] %v2198_v47  ;;  %2078 = vrot.lane.b32.xlu1 %v970_v41, %s3418_s7  ;;  %2016 = vrot.lane.b32.xlu0 %v4034_v40, %s3422_s10  ;;  %v4130_v41 = vpop.f32.mrf.mxu1  ;;  %v3158_v47 = vpop.f32.mrf.mxu0 }
 0x2c9   : > { %v1895_v49 = vpop.permute.xlu1 %1894  ;;  %v4075_v59 = vpop.permute.xlu0 %1956 }
 0x2ca   : > { %v2199_v52 = vsel %vm2197_vm4, %v2190_v48, %v1895_v49  ;;  %v2185_v48 = vsel %vm325_vm0, %v3863_v31, %v3996_v14 }
 0x2cb   : > { %2734 = vst [vmem:[%s4008_s13 + $0x40] sm:$0xff] %v2199_v52  ;;  %2136 = vrot.lane.b32.xlu0 %v3137_v46, %s3420_s9  ;;  %2018 = vrot.lane.b32.xlu1 %v4052_v50, %s3422_s10 }
 0x2cd   : > { %v4082_v0 = vpop.permute.xlu1 %1958  ;;  %v4087_v1 = vpop.permute.xlu0 %1980 }
 0x2cf   : > { %2160 = vrot.lane.b32.xlu0 %v3137_v46, %s3418_s7  ;;  %2138 = vrot.lane.b32.xlu1 %v3138_v53, %s3420_s9 }
 0x2d1   : > { %v4091_v3 = vpop.permute.xlu1 %1982 }
 0x2d3   : > { %2012 = vrot.lane.b32.xlu0 %v4041_v45, %s3422_s10  ;;  %2162 = vrot.lane.b32.xlu1 %v3138_v53, %s3418_s7 }
 0x2d7   : > { %2132 = vrot.lane.b32.xlu0 %v1121_v51, %s3420_s9  ;;  %2014 = vrot.lane.b32.xlu1 %v4064_v22, %s3422_s10 }
 0x2db   : > { %2156 = vrot.lane.b32.xlu0 %v1121_v51, %s3418_s7  ;;  %2134 = vrot.lane.b32.xlu1 %v1124_v55, %s3420_s9 }
 0x2df   : > { %2158 = vrot.lane.b32.xlu1 %v1124_v55, %s3418_s7  ;;  %2024 = vrot.lane.b32.xlu0 %v4069_v54, %s3422_s10  ;;  %v4158_v55 = vpop.f32.mrf.mxu1 }
 0x2e3   : > { %2144 = vrot.lane.b32.xlu0 %v3141_v57, %s3420_s9  ;;  %2026 = vrot.lane.b32.xlu1 %v4080_v61, %s3422_s10 }
 0x2e7   : > { %2168 = vrot.lane.b32.xlu0 %v3141_v57, %s3418_s7  ;;  %2146 = vrot.lane.b32.xlu1 %v3142_v2, %s3420_s9  ;;  %v4165_v57 = vpop.f32.mrf.mxu1 }
 0x2e9   : > { %v1881_v5 = vpop.permute.xlu0 %1880 }
 0x2ea   : > { %v2195_v12 = vsel %vm2188_vm3, %v2186_v8, %v1881_v5 }
 0x2eb   : > { %2020 = vrot.lane.b32.xlu0 %v4073_v56, %s3422_s10  ;;  %2170 = vrot.lane.b32.xlu1 %v3142_v2, %s3418_s7 }
 0x2ed   : > { %v1905_v15 = vpop.permute.xlu0 %1904  ;;  %v1883_v18 = vpop.permute.xlu1 %1882 }
 0x2ee   : > { %v2204_v23 = vsel %vm2197_vm4, %v2195_v12, %v1905_v15  ;;  %v2196_v26 = vsel %vm2188_vm3, %v2187_v24, %v1883_v18  ;;  %v4178_v18 = vpop.f32.mrf.mxu1 }
 0x2ef   : > { %2774 = vst [vmem:[%s4008_s13 + $0x180] sm:$0xff] %v2204_v23  ;;  %2140 = vrot.lane.b32.xlu0 %v1137_v63, %s3420_s9  ;;  %2022 = vrot.lane.b32.xlu1 %v4100_v20, %s3422_s10 }
 0x2f1   : > { %v4111_v6 = vpop.permute.xlu0 %1968  ;;  %v1907_v27 = vpop.permute.xlu1 %1906 }
 0x2f2   : > { %v2205_v35 = vsel %vm2197_vm4, %v2196_v26, %v1907_v27  ;;  %v4194_v27 = vpop.f32.mrf.mxu1 }
 0x2f3   : > { %2782 = vst [vmem:[%s4008_s13 + $0x1c0] sm:$0xff] %v2205_v35  ;;  %2164 = vrot.lane.b32.xlu0 %v1137_v63, %s3418_s7  ;;  %2142 = vrot.lane.b32.xlu1 %v1140_v33, %s3420_s9  ;;  %v1290_v63 = vpop.f32.mrf.mxu0 }
 0x2f5   : > { %v4119_v17 = vpop.permute.xlu0 %1992  ;;  %v4121_v34 = vpop.permute.xlu1 %1970 }
 0x2f6   : > { %v3161_v23 = vpop.f32.mrf.mxu0 }
 0x2f7   : > { %2166 = vrot.lane.b32.xlu1 %v1140_v33, %s3418_s7  ;;  %2104 = vrot.lane.b32.xlu0 %v4113_v32, %s3422_s10 }
 0x2f9   : > { %v1877_v13 = vpop.permute.xlu0 %1876  ;;  %v4128_v21 = vpop.permute.xlu1 %1994 }
 0x2fa   : > { %v2193_v25 = vsel %vm2188_vm3, %v2184_v43, %v1877_v13 }
 0x2fb   : > { %2322 = vrot.lane.b32.xlu0 %v3157_v9, %s3420_s9  ;;  %2106 = vrot.lane.b32.xlu1 %v4130_v41, %s3422_s10 }
 0x2fd   : > { %v1901_v44 = vpop.permute.xlu0 %1900  ;;  %v1879_v46 = vpop.permute.xlu1 %1878 }
 0x2fe   : > { %v2202_v19 = vsel %vm2197_vm4, %v2193_v25, %v1901_v44  ;;  %v2194_v49 = vsel %vm2188_vm3, %v2185_v48, %v1879_v46  ;;  %v4226_v46 = vpop.f32.mrf.mxu1 }
 0x2ff   : > { %2758 = vst [vmem:[%s4008_s13 + $0x100] sm:$0xff] %v2202_v19  ;;  %2346 = vrot.lane.b32.xlu0 %v3157_v9, %s3418_s7  ;;  %2324 = vrot.lane.b32.xlu1 %v3158_v47, %s3420_s9 }
 0x301   : > { %v4147_v51 = vpop.permute.xlu0 %1964  ;;  %v1903_v28 = vpop.permute.xlu1 %1902 }
 0x302   : > { %v2203_v10 = vsel %vm2197_vm4, %v2194_v49, %v1903_v28 }
 0x303   : > { %2766 = vst [vmem:[%s4008_s13 + $0x140] sm:$0xff] %v2203_v10  ;;  %2100 = vrot.lane.b32.xlu0 %v4123_v30, %s3422_s10  ;;  %2348 = vrot.lane.b32.xlu1 %v3158_v47, %s3418_s7  ;;  %v4233_v47 = vpop.f32.mrf.mxu1 }
 0x305   : > { %v4154_v52 = vpop.permute.xlu0 %1988  ;;  %v4156_v53 = vpop.permute.xlu1 %1966 }
 0x307   : > { %2318 = vrot.lane.b32.xlu0 %v1287_v42, %s3420_s9  ;;  %2102 = vrot.lane.b32.xlu1 %v4158_v55, %s3422_s10 }
 0x309   : > { %v4163_v31 = vpop.permute.xlu1 %1990  ;;  %v1929_v14 = vpop.permute.xlu0 %1928 }
 0x30a   : > { %v2208_v2 = vsel %vm325_vm0, %v3955_v58, %v1929_v14  ;;  %v4246_v14 = vpop.f32.mrf.mxu1 }
 0x30b   : > { %v2216_v5 = vsel %vm2188_vm3, %v2208_v2, %v4016_v29  ;;  %2342 = vrot.lane.b32.xlu0 %v1287_v42, %s3418_s7  ;;  %2320 = vrot.lane.b32.xlu1 %v1290_v63, %s3420_s9 }
 0x30c   : > { %v2224_v8 = vsel %vm2197_vm4, %v2216_v5, %v4023_v36 }
 0x30d   : > { %2743 = vst [vmem:[%s4008_s13 + $0x88] sm:$0xff] %v2224_v8  ;;  %v4176_v12 = vpop.permute.xlu0 %2048  ;;  %v1931_v15 = vpop.permute.xlu1 %1930 }
 0x30e   : > { %v2209_v58 = vsel %vm325_vm0, %v3964_v62, %v1931_v15  ;;  %v1303_v62 = vpop.f32.mrf.mxu0  ;;  %v4262_v8 = vpop.f32.mrf.mxu1 }
 0x30f   : > { %v2217_v29 = vsel %vm2188_vm3, %v2209_v58, %v4025_v37  ;;  %2344 = vrot.lane.b32.xlu1 %v1290_v63, %s3418_s7  ;;  %2112 = vrot.lane.b32.xlu0 %v4165_v57, %s3422_s10 }
 0x310   : > { %v2225_v36 = vsel %vm2197_vm4, %v2217_v29, %v4032_v39  ;;  %v3162_v35 = vpop.f32.mrf.mxu0 }
 0x311   : > { %2751 = vst [vmem:[%s4008_s13 + $0xc8] sm:$0xff] %v2225_v36  ;;  %v4190_v24 = vpop.permute.xlu0 %2072  ;;  %v4192_v26 = vpop.permute.xlu1 %2050 }
 0x312   : > { %v1306_v19 = vpop.f32.mrf.mxu0 }
 0x313   : > { %2330 = vrot.lane.b32.xlu0 %v3161_v23, %s3420_s9  ;;  %2114 = vrot.lane.b32.xlu1 %v4194_v27, %s3422_s10 }
 0x314   : > { %v3177_v63 = vpop.f32.mrf.mxu0 }
 0x315   : > { %v1925_v37 = vpop.permute.xlu0 %1924  ;;  %v4199_v33 = vpop.permute.xlu1 %2074 }
 0x316   : > { %v2206_v39 = vsel %vm325_vm0, %v3959_v60, %v1925_v37 }
 0x317   : > { %v2214_v9 = vsel %vm2188_vm3, %v2206_v39, %v4075_v59  ;;  %2354 = vrot.lane.b32.xlu0 %v3161_v23, %s3418_s7  ;;  %2332 = vrot.lane.b32.xlu1 %v3162_v35, %s3420_s9  ;;  %v4294_v39 = vpop.f32.mrf.mxu1 }
 0x318   : > { %v2222_v13 = vsel %vm2197_vm4, %v2214_v9, %v4087_v1 }
 0x319   : > { %2727 = vst [vmem:[%s4008_s13 + $0x8] sm:$0xff] %v2222_v13  ;;  %v4210_v42 = vpop.permute.xlu0 %2044  ;;  %v1927_v43 = vpop.permute.xlu1 %1926 }
 0x31a   : > { %v2207_v25 = vsel %vm325_vm0, %v3974_v4, %v1927_v43  ;;  %v4301_v9 = vpop.f32.mrf.mxu1 }
 0x31b   : > { %v2215_v60 = vsel %vm2188_vm3, %v2207_v25, %v4082_v0  ;;  %2108 = vrot.lane.b32.xlu0 %v4178_v18, %s3422_s10  ;;  %2356 = vrot.lane.b32.xlu1 %v3162_v35, %s3418_s7 }
 0x31c   : > { %v2223_v59 = vsel %vm2197_vm4, %v2215_v60, %v4091_v3 }
 0x31d   : > { %2735 = vst [vmem:[%s4008_s13 + $0x48] sm:$0xff] %v2223_v59  ;;  %v4222_v1 = vpop.permute.xlu0 %2068  ;;  %v4224_v44 = vpop.permute.xlu1 %2046 }
 0x31f   : > { %2326 = vrot.lane.b32.xlu0 %v1303_v62, %s3420_s9  ;;  %2110 = vrot.lane.b32.xlu1 %v4226_v46, %s3422_s10 }
 0x321   : > { %v4231_v4 = vpop.permute.xlu1 %2070  ;;  %v1937_v0 = vpop.permute.xlu0 %1936 }
 0x322   : > { %v2212_v3 = vsel %vm325_vm0, %v3983_v7, %v1937_v0  ;;  %v4314_v0 = vpop.f32.mrf.mxu1 }
 0x323   : > { %v2220_v48 = vsel %vm2188_vm3, %v2212_v3, %v4111_v6  ;;  %2350 = vrot.lane.b32.xlu0 %v1303_v62, %s3418_s7  ;;  %2328 = vrot.lane.b32.xlu1 %v1306_v19, %s3420_s9 }
 0x324   : > { %v2228_v49 = vsel %vm2197_vm4, %v2220_v48, %v4119_v17 }
 0x325   : > { %2775 = vst [vmem:[%s4008_s13 + $0x188] sm:$0xff] %v2228_v49  ;;  %v4244_v28 = vpop.permute.xlu0 %2056  ;;  %v1939_v10 = vpop.permute.xlu1 %1938 }
 0x326   : > { %v2213_v7 = vsel %vm325_vm0, %v3999_v16, %v1939_v10  ;;  %v1457_v16 = vpop.f32.mrf.mxu0  ;;  %v4330_v49 = vpop.f32.mrf.mxu1 }
 0x327   : > { %v2221_v6 = vsel %vm2188_vm3, %v2213_v7, %v4121_v34  ;;  %2352 = vrot.lane.b32.xlu1 %v1306_v19, %s3418_s7  ;;  %2290 = vrot.lane.b32.xlu0 %v4233_v47, %s3422_s10 }
 0x328   : > { %v2229_v17 = vsel %vm2197_vm4, %v2221_v6, %v4128_v21  ;;  %v3178_v23 = vpop.f32.mrf.mxu0 }
 0x329   : > { %2783 = vst [vmem:[%s4008_s13 + $0x1c8] sm:$0xff] %v2229_v17  ;;  %v4258_v2 = vpop.permute.xlu0 %2080  ;;  %v4260_v5 = vpop.permute.xlu1 %2058 }
 0x32a   : > { %v1460_v13 = vpop.f32.mrf.mxu0 }
 0x32b   : > { %2410 = vrot.lane.b32.xlu0 %v3177_v63, %s3420_s9  ;;  %2292 = vrot.lane.b32.xlu1 %v4262_v8, %s3422_s10 }
 0x32c   : > { %v3181_v19 = vpop.f32.mrf.mxu0 }
 0x32d   : > { %v1933_v34 = vpop.permute.xlu0 %1932  ;;  %v4267_v15 = vpop.permute.xlu1 %2082 }
 0x32e   : > { %v2210_v21 = vsel %vm325_vm0, %v3991_v11, %v1933_v34 }
 0x32f   : > { %v2218_v58 = vsel %vm2188_vm3, %v2210_v21, %v4147_v51  ;;  %2434 = vrot.lane.b32.xlu0 %v3177_v63, %s3418_s7  ;;  %2412 = vrot.lane.b32.xlu1 %v3178_v23, %s3420_s9  ;;  %v4362_v21 = vpop.f32.mrf.mxu1 }
 0x330   : > { %v2226_v29 = vsel %vm2197_vm4, %v2218_v58, %v4154_v52 }
 0x331   : > { %2759 = vst [vmem:[%s4008_s13 + $0x108] sm:$0xff] %v2226_v29  ;;  %v4278_v36 = vpop.permute.xlu0 %2052  ;;  %v1935_v62 = vpop.permute.xlu1 %1934 }
 0x332   : > { %v2211_v37 = vsel %vm325_vm0, %v4027_v38, %v1935_v62  ;;  %v4369_v58 = vpop.f32.mrf.mxu1 }
 0x333   : > { %v2219_v11 = vsel %vm2188_vm3, %v2211_v37, %v4156_v53  ;;  %2286 = vrot.lane.b32.xlu0 %v4246_v14, %s3422_s10  ;;  %2436 = vrot.lane.b32.xlu1 %v3178_v23, %s3418_s7 }
 0x334   : > { %v2227_v51 = vsel %vm2197_vm4, %v2219_v11, %v4163_v31 }
 0x335   : > { %2767 = vst [vmem:[%s4008_s13 + $0x148] sm:$0xff] %v2227_v51  ;;  %v4290_v52 = vpop.permute.xlu0 %2076  ;;  %v4292_v35 = vpop.permute.xlu1 %2054 }
 0x337   : > { %2406 = vrot.lane.b32.xlu0 %v1457_v16, %s3420_s9  ;;  %2288 = vrot.lane.b32.xlu1 %v4294_v39, %s3422_s10 }
 0x339   : > { %v4299_v38 = vpop.permute.xlu1 %2078  ;;  %v2017_v53 = vpop.permute.xlu0 %2016 }
 0x33a   : > { %v2232_v31 = vsel %vm325_vm0, %v4034_v40, %v2017_v53  ;;  %v4382_v53 = vpop.f32.mrf.mxu1 }
 0x33b   : > { %v2240_v43 = vsel %vm2188_vm3, %v2232_v31, %v4176_v12  ;;  %2430 = vrot.lane.b32.xlu0 %v1457_v16, %s3418_s7  ;;  %2408 = vrot.lane.b32.xlu1 %v1460_v13, %s3420_s9 }
 0x33c   : > { %v2248_v25 = vsel %vm2197_vm4, %v2240_v43, %v4190_v24 }
 0x33d   : > { %2744 = vst [vmem:[%s4008_s13 + $0x90] sm:$0xff] %v2248_v25  ;;  %v4312_v60 = vpop.permute.xlu0 %2136  ;;  %v2019_v59 = vpop.permute.xlu1 %2018 }
 0x33e   : > { %v2233_v40 = vsel %vm325_vm0, %v4052_v50, %v2019_v59  ;;  %v1473_v50 = vpop.f32.mrf.mxu0  ;;  %v4398_v25 = vpop.f32.mrf.mxu1 }
 0x33f   : > { %v2241_v12 = vsel %vm2188_vm3, %v2233_v40, %v4192_v26  ;;  %2432 = vrot.lane.b32.xlu1 %v1460_v13, %s3418_s7  ;;  %2298 = vrot.lane.b32.xlu0 %v4301_v9, %s3422_s10 }
 0x340   : > { %v2249_v24 = vsel %vm2197_vm4, %v2241_v12, %v4199_v33  ;;  %v3182_v63 = vpop.f32.mrf.mxu0 }
 0x341   : > { %2752 = vst [vmem:[%s4008_s13 + $0xd0] sm:$0xff] %v2249_v24  ;;  %v4326_v3 = vpop.permute.xlu0 %2160  ;;  %v4328_v48 = vpop.permute.xlu1 %2138 }
 0x342   : > { %v1476_v29 = vpop.f32.mrf.mxu0 }
 0x343   : > { %2418 = vrot.lane.b32.xlu0 %v3181_v19, %s3420_s9  ;;  %2300 = vrot.lane.b32.xlu1 %v4330_v49, %s3422_s10 }
 0x344   : > { %v3197_v13 = vpop.f32.mrf.mxu0 }
 0x345   : > { %v2013_v26 = vpop.permute.xlu0 %2012  ;;  %v4335_v10 = vpop.permute.xlu1 %2162 }
 0x346   : > { %v2230_v33 = vsel %vm325_vm0, %v4041_v45, %v2013_v26 }
 0x347   : > { %v2238_v7 = vsel %vm2188_vm3, %v2230_v33, %v4210_v42  ;;  %2442 = vrot.lane.b32.xlu0 %v3181_v19, %s3418_s7  ;;  %2420 = vrot.lane.b32.xlu1 %v3182_v63, %s3420_s9  ;;  %v4430_v33 = vpop.f32.mrf.mxu1 }
 0x348   : > { %v2246_v6 = vsel %vm2197_vm4, %v2238_v7, %v4222_v1 }
 0x349   : > { %2728 = vst [vmem:[%s4008_s13 + $0x10] sm:$0xff] %v2246_v6  ;;  %v4346_v17 = vpop.permute.xlu0 %2132  ;;  %v2015_v16 = vpop.permute.xlu1 %2014 }
 0x34a   : > { %v2231_v34 = vsel %vm325_vm0, %v4064_v22, %v2015_v16  ;;  %v4437_v7 = vpop.f32.mrf.mxu1 }
 0x34b   : > { %v2239_v45 = vsel %vm2188_vm3, %v2231_v34, %v4224_v44  ;;  %2294 = vrot.lane.b32.xlu0 %v4314_v0, %s3422_s10  ;;  %2444 = vrot.lane.b32.xlu1 %v3182_v63, %s3418_s7 }
 0x34c   : > { %v2247_v42 = vsel %vm2197_vm4, %v2239_v45, %v4231_v4 }
 0x34d   : > { %2736 = vst [vmem:[%s4008_s13 + $0x50] sm:$0xff] %v2247_v42  ;;  %v4358_v1 = vpop.permute.xlu0 %2156  ;;  %v4360_v23 = vpop.permute.xlu1 %2134 }
 0x34f   : > { %2414 = vrot.lane.b32.xlu0 %v1473_v50, %s3420_s9  ;;  %2296 = vrot.lane.b32.xlu1 %v4362_v21, %s3422_s10 }
 0x351   : > { %v4367_v22 = vpop.permute.xlu1 %2158  ;;  %v2025_v44 = vpop.permute.xlu0 %2024 }
 0x352   : > { %v2236_v4 = vsel %vm325_vm0, %v4069_v54, %v2025_v44  ;;  %v4450_v44 = vpop.f32.mrf.mxu1 }
 0x353   : > { %v2244_v62 = vsel %vm2188_vm3, %v2236_v4, %v4244_v28  ;;  %2438 = vrot.lane.b32.xlu0 %v1473_v50, %s3418_s7  ;;  %2416 = vrot.lane.b32.xlu1 %v1476_v29, %s3420_s9 }
 0x354   : > { %v2252_v37 = vsel %vm2197_vm4, %v2244_v62, %v4258_v2 }
 0x355   : > { %2776 = vst [vmem:[%s4008_s13 + $0x190] sm:$0xff] %v2252_v37  ;;  %v4380_v11 = vpop.permute.xlu0 %2144  ;;  %v2027_v51 = vpop.permute.xlu1 %2026 }
 0x356   : > { %v2237_v54 = vsel %vm325_vm0, %v4080_v61, %v2027_v51  ;;  %v1627_v61 = vpop.f32.mrf.mxu0  ;;  %v4466_v37 = vpop.f32.mrf.mxu1 }
 0x357   : > { %v2245_v28 = vsel %vm2188_vm3, %v2237_v54, %v4260_v5  ;;  %2440 = vrot.lane.b32.xlu1 %v1476_v29, %s3418_s7  ;;  %2378 = vrot.lane.b32.xlu0 %v4369_v58, %s3422_s10 }
 0x358   : > { %v2253_v2 = vsel %vm2197_vm4, %v2245_v28, %v4267_v15  ;;  %v3198_v19 = vpop.f32.mrf.mxu0 }
 0x359   : > { %2784 = vst [vmem:[%s4008_s13 + $0x1d0] sm:$0xff] %v2253_v2  ;;  %v4394_v31 = vpop.permute.xlu0 %2168  ;;  %v4396_v43 = vpop.permute.xlu1 %2146 }
 0x35a   : > { %v1630_v6 = vpop.f32.mrf.mxu0 }
 0x35b   : > { %2498 = vrot.lane.b32.xlu0 %v3197_v13, %s3420_s9  ;;  %2380 = vrot.lane.b32.xlu1 %v4398_v25, %s3422_s10 }
 0x35c   : > { %v3201_v29 = vpop.f32.mrf.mxu0 }
 0x35d   : > { %v2021_v5 = vpop.permute.xlu0 %2020  ;;  %v4403_v59 = vpop.permute.xlu1 %2170 }
 0x35e   : > { %v2234_v15 = vsel %vm325_vm0, %v4073_v56, %v2021_v5 }
 0x35f   : > { %v2242_v40 = vsel %vm2188_vm3, %v2234_v15, %v4278_v36  ;;  %2522 = vrot.lane.b32.xlu0 %v3197_v13, %s3418_s7  ;;  %2500 = vrot.lane.b32.xlu1 %v3198_v19, %s3420_s9  ;;  %v4498_v15 = vpop.f32.mrf.mxu1 }
 0x360   : > { %v2250_v12 = vsel %vm2197_vm4, %v2242_v40, %v4290_v52 }
 0x361   : > { %2760 = vst [vmem:[%s4008_s13 + $0x110] sm:$0xff] %v2250_v12  ;;  %v4414_v24 = vpop.permute.xlu0 %2140  ;;  %v2023_v50 = vpop.permute.xlu1 %2022 }
 0x362   : > { %v2235_v26 = vsel %vm325_vm0, %v4100_v20, %v2023_v50  ;;  %v4505_v40 = vpop.f32.mrf.mxu1 }
 0x363   : > { %v2243_v56 = vsel %vm2188_vm3, %v2235_v26, %v4292_v35  ;;  %2374 = vrot.lane.b32.xlu0 %v4382_v53, %s3422_s10  ;;  %2524 = vrot.lane.b32.xlu1 %v3198_v19, %s3418_s7 }
 0x364   : > { %v2251_v36 = vsel %vm2197_vm4, %v2243_v56, %v4299_v38 }
 0x365   : > { %2768 = vst [vmem:[%s4008_s13 + $0x150] sm:$0xff] %v2251_v36  ;;  %v4426_v52 = vpop.permute.xlu0 %2164  ;;  %v4428_v63 = vpop.permute.xlu1 %2142 }
 0x367   : > { %2494 = vrot.lane.b32.xlu0 %v1627_v61, %s3420_s9  ;;  %2376 = vrot.lane.b32.xlu1 %v4430_v33, %s3422_s10 }
 0x369   : > { %v4435_v20 = vpop.permute.xlu1 %2166  ;;  %v2105_v35 = vpop.permute.xlu0 %2104 }
 0x36a   : > { %v2256_v38 = vsel %vm325_vm0, %v4113_v32, %v2105_v35  ;;  %v4518_v35 = vpop.f32.mrf.mxu1 }
 0x36b   : > { %v2264_v16 = vsel %vm2188_vm3, %v2256_v38, %v4312_v60  ;;  %2518 = vrot.lane.b32.xlu0 %v1627_v61, %s3418_s7  ;;  %2496 = vrot.lane.b32.xlu1 %v1630_v6, %s3420_s9 }
 0x36c   : > { %v2272_v34 = vsel %vm2197_vm4, %v2264_v16, %v4326_v3  ;;  %v4534_v16 = vpop.f32.mrf.mxu1 }
 0x36d   : > { %2745 = vst [vmem:[%s4008_s13 + $0x98] sm:$0xff] %v2272_v34  ;;  %v4448_v45 = vpop.permute.xlu0 %2322  ;;  %v2107_v42 = vpop.permute.xlu1 %2106 }
 0x36e   : > { %v2257_v32 = vsel %vm325_vm0, %v4130_v41, %v2107_v42  ;;  %v1643_v41 = vpop.f32.mrf.mxu0  ;;  %v4540_v42 = vpop.f32.mrf.mxu1 }
 0x36f   : > { %v2265_v60 = vsel %vm2188_vm3, %v2257_v32, %v4328_v48  ;;  %2520 = vrot.lane.b32.xlu1 %v1630_v6, %s3418_s7  ;;  %2386 = vrot.lane.b32.xlu0 %v4437_v7, %s3422_s10 }
 0x370   : > { %v2273_v3 = vsel %vm2197_vm4, %v2265_v60, %v4335_v10  ;;  %v3202_v13 = vpop.f32.mrf.mxu0 }
 0x371   : > { %2753 = vst [vmem:[%s4008_s13 + $0xd8] sm:$0xff] %v2273_v3  ;;  %v4462_v4 = vpop.permute.xlu0 %2346  ;;  %v4464_v62 = vpop.permute.xlu1 %2324 }
 0x373   : > { %2506 = vrot.lane.b32.xlu0 %v3201_v29, %s3420_s9  ;;  %2388 = vrot.lane.b32.xlu1 %v4466_v37, %s3422_s10 }
 0x375   : > { %v2101_v48 = vpop.permute.xlu0 %2100  ;;  %v4471_v51 = vpop.permute.xlu1 %2348 }
 0x376   : > { %v2254_v10 = vsel %vm325_vm0, %v4123_v30, %v2101_v48  ;;  %v4554_v48 = vpop.f32.mrf.mxu1 }
 0x377   : > { %v2262_v54 = vsel %vm2188_vm3, %v2254_v10, %v4346_v17  ;;  %2530 = vrot.lane.b32.xlu0 %v3201_v29, %s3418_s7  ;;  %2508 = vrot.lane.b32.xlu1 %v3202_v13, %s3420_s9 }
 0x378   : > { %v2270_v28 = vsel %vm2197_vm4, %v2262_v54, %v4358_v1  ;;  %v4570_v54 = vpop.f32.mrf.mxu1 }
 0x379   : > { %2729 = vst [vmem:[%s4008_s13 + $0x18] sm:$0xff] %v2270_v28  ;;  %v4482_v2 = vpop.permute.xlu0 %2318  ;;  %v2103_v61 = vpop.permute.xlu1 %2102 }
 0x37a   : > { %v2255_v5 = vsel %vm325_vm0, %v4158_v55, %v2103_v61  ;;  %v4576_v61 = vpop.f32.mrf.mxu1 }
 0x37b   : > { %v2263_v30 = vsel %vm2188_vm3, %v2255_v5, %v4360_v23  ;;  %2382 = vrot.lane.b32.xlu0 %v4450_v44, %s3422_s10  ;;  %2532 = vrot.lane.b32.xlu1 %v3202_v13, %s3418_s7 }
 0x37c   : > { %v2271_v17 = vsel %vm2197_vm4, %v2263_v30, %v4367_v22  ;;  %v1646_v22 = vpop.f32.mrf.mxu0 }
 0x37d   : > { %2737 = vst [vmem:[%s4008_s13 + $0x58] sm:$0xff] %v2271_v17  ;;  %v4494_v1 = vpop.permute.xlu0 %2342  ;;  %v4496_v19 = vpop.permute.xlu1 %2320 }
 0x37f   : > { %2502 = vrot.lane.b32.xlu0 %v1643_v41, %s3420_s9  ;;  %2384 = vrot.lane.b32.xlu1 %v4498_v15, %s3422_s10 }
 0x381   : > { %v4503_v55 = vpop.permute.xlu1 %2344  ;;  %v2113_v23 = vpop.permute.xlu0 %2112 }
 0x382   : > { %v2260_v12 = vsel %vm325_vm0, %v4165_v57, %v2113_v23 }
 0x383   : > { %v2268_v50 = vsel %vm2188_vm3, %v2260_v12, %v4380_v11  ;;  %2526 = vrot.lane.b32.xlu0 %v1643_v41, %s3418_s7  ;;  %2504 = vrot.lane.b32.xlu1 %v1646_v22, %s3420_s9  ;;  %v4590_v12 = vpop.f32.mrf.mxu1 }
 0x384   : > { %v2276_v26 = vsel %vm2197_vm4, %v2268_v50, %v4394_v31 }
 0x385   : > { %2777 = vst [vmem:[%s4008_s13 + $0x198] sm:$0xff] %v2276_v26  ;;  %v4516_v56 = vpop.permute.xlu0 %2330  ;;  %v2115_v36 = vpop.permute.xlu1 %2114 }
 0x386   : > { %v2261_v6 = vsel %vm325_vm0, %v4194_v27, %v2115_v36  ;;  %v3217_v27 = vpop.f32.mrf.mxu0  ;;  %v4606_v36 = vpop.f32.mrf.mxu1 }
 0x387   : > { %v2269_v57 = vsel %vm2188_vm3, %v2261_v6, %v4396_v43  ;;  %2528 = vrot.lane.b32.xlu1 %v1646_v22, %s3418_s7  ;;  %2466 = vrot.lane.b32.xlu0 %v4505_v40, %s3422_s10 }
 0x388   : > { %v2277_v11 = vsel %vm2197_vm4, %v2269_v57, %v4403_v59  ;;  %v1797_v59 = vpop.f32.mrf.mxu0 }
 0x389   : > { %2785 = vst [vmem:[%s4008_s13 + $0x1d8] sm:$0xff] %v2277_v11  ;;  %v4530_v31 = vpop.permute.xlu0 %2354  ;;  %v4532_v38 = vpop.permute.xlu1 %2332 }
 0x38b   : > { %2586 = vrot.lane.b32.xlu1 %v3217_v27, %s3420_s9  ;;  %2610 = vrot.lane.b32.xlu0 %v3217_v27, %s3418_s7 }
 0x38d   : > { %v2109_v43 = vpop.permute.xlu0 %2108  ;;  %v4538_v34 = vpop.permute.xlu1 %2356 }
 0x38e   : > { %v2258_v29 = vsel %vm325_vm0, %v4178_v18, %v2109_v43 }
 0x38f   : > { %v2266_v32 = vsel %vm2188_vm3, %v2258_v29, %v4414_v24  ;;  %2582 = vrot.lane.b32.xlu1 %v1797_v59, %s3420_s9  ;;  %2462 = vrot.lane.b32.xlu0 %v4518_v35, %s3422_s10 }
 0x390   : > { %v2274_v60 = vsel %vm2197_vm4, %v2266_v32, %v4426_v52 }
 0x391   : > { %2761 = vst [vmem:[%s4008_s13 + $0x118] sm:$0xff] %v2274_v60  ;;  %v4552_v3 = vpop.permute.xlu0 %2326  ;;  %v2111_v41 = vpop.permute.xlu1 %2110 }
 0x392   : > { %v2259_v18 = vsel %vm325_vm0, %v4226_v46, %v2111_v41  ;;  %v3218_v46 = vpop.f32.mrf.mxu0 }
 0x393   : > { %v2267_v24 = vsel %vm2188_vm3, %v2259_v18, %v4428_v63  ;;  %2606 = vrot.lane.b32.xlu0 %v1797_v59, %s3418_s7  ;;  %2468 = vrot.lane.b32.xlu1 %v4534_v16, %s3422_s10 }
 0x394   : > { %v2275_v52 = vsel %vm2197_vm4, %v2267_v24, %v4435_v20  ;;  %v1800_v20 = vpop.f32.mrf.mxu0 }
 0x395   : > { %2769 = vst [vmem:[%s4008_s13 + $0x158] sm:$0xff] %v2275_v52  ;;  %v4566_v13 = vpop.permute.xlu0 %2350  ;;  %v4568_v10 = vpop.permute.xlu1 %2328 }
 0x397   : > { %2588 = vrot.lane.b32.xlu0 %v3218_v46, %s3420_s9  ;;  %2612 = vrot.lane.b32.xlu1 %v3218_v46, %s3418_s7 }
 0x399   : > { %v4574_v63 = vpop.permute.xlu1 %2352  ;;  %v2291_v28 = vpop.permute.xlu0 %2290 }
 0x39a   : > { %v2632_v5 = vsel %vm325_vm0, %v4233_v47, %v2291_v28 }
 0x39b   : > { %v2640_v30 = vsel %vm2188_vm3, %v2632_v5, %v4448_v45  ;;  %2584 = vrot.lane.b32.xlu0 %v1800_v20, %s3420_s9  ;;  %2464 = vrot.lane.b32.xlu1 %v4540_v42, %s3422_s10 }
 0x39c   : > { %v2648_v17 = vsel %vm2197_vm4, %v2640_v30, %v4462_v4 }
 0x39d   : > { %2746 = vst [vmem:[%s4008_s13 + $0xa0] sm:$0xff] %v2648_v17  ;;  %v4588_v23 = vpop.permute.xlu0 %2410  ;;  %v2293_v22 = vpop.permute.xlu1 %2292 }
 0x39e   : > { %v2633_v47 = vsel %vm325_vm0, %v4262_v8, %v2293_v22  ;;  %v4608_v8 = vpop.f32.mrf.mxu0 }
 0x39f   : > { %v2641_v45 = vsel %vm2188_vm3, %v2633_v47, %v4464_v62  ;;  %2608 = vrot.lane.b32.xlu1 %v1800_v20, %s3418_s7  ;;  %2474 = vrot.lane.b32.xlu0 %v4554_v48, %s3422_s10 }
 0x3a0   : > { %v2649_v4 = vsel %vm2197_vm4, %v2641_v45, %v4471_v51  ;;  %v4616_v51 = vpop.f32.mrf.mxu1  ;;  %v1813_v57 = vpop.f32.mrf.mxu0 }
 0x3a1   : > { %2754 = vst [vmem:[%s4008_s13 + $0xe0] sm:$0xff] %v2649_v4  ;;  %v4602_v50 = vpop.permute.xlu0 %2434  ;;  %v4604_v26 = vpop.permute.xlu1 %2412 }
 0x3a2   : > { %v4629_v32 = vpop.f32.mrf.mxu1  ;;  %v3222_v60 = vpop.f32.mrf.mxu0 }
 0x3a3   : > { %2594 = vrot.lane.b32.xlu1 %v4608_v8, %s3420_s9  ;;  %2470 = vrot.lane.b32.xlu0 %v4570_v54, %s3422_s10 }
 0x3a4   : > { %v4645_v24 = vpop.f32.mrf.mxu1 }
 0x3a5   : > { %v2287_v62 = vpop.permute.xlu0 %2286  ;;  %v4614_v6 = vpop.permute.xlu1 %2436 }
 0x3a6   : > { %v2630_v11 = vsel %vm325_vm0, %v4246_v14, %v2287_v62  ;;  %v4652_v46 = vpop.f32.mrf.mxu1 }
 0x3a7   : > { %v2638_v27 = vsel %vm2188_vm3, %v2630_v11, %v4482_v2  ;;  %2590 = vrot.lane.b32.xlu1 %v1813_v57, %s3420_s9  ;;  %2614 = vrot.lane.b32.xlu0 %v1813_v57, %s3418_s7 }
 0x3a8   : > { %v2646_v43 = vsel %vm2197_vm4, %v2638_v27, %v4494_v1  ;;  %v4666_v17 = vpop.f32.mrf.mxu1 }
 0x3a9   : > { %2730 = vst [vmem:[%s4008_s13 + $0x20] sm:$0xff] %v2646_v43  ;;  %v4627_v59 = vpop.permute.xlu0 %2406  ;;  %v2289_v29 = vpop.permute.xlu1 %2288 }
 0x3aa   : > { %v2631_v14 = vsel %vm325_vm0, %v4294_v39, %v2289_v29  ;;  %v1816_v39 = vpop.f32.mrf.mxu0  ;;  %v4679_v45 = vpop.f32.mrf.mxu1 }
 0x3ab   : > { %v2639_v2 = vsel %vm2188_vm3, %v2631_v14, %v4496_v19  ;;  %2596 = vrot.lane.b32.xlu0 %v3222_v60, %s3420_s9  ;;  %2476 = vrot.lane.b32.xlu1 %v4576_v61, %s3422_s10 }
 0x3ac   : > { %v2647_v1 = vsel %vm2197_vm4, %v2639_v2, %v4503_v55  ;;  %v4685_v4 = vpop.f32.mrf.mxu1 }
 0x3ad   : > { %2738 = vst [vmem:[%s4008_s13 + $0x60] sm:$0xff] %v2647_v1  ;;  %v4641_v41 = vpop.permute.xlu0 %2430  ;;  %v4643_v18 = vpop.permute.xlu1 %2408 }
 0x3af   : > { %2592 = vrot.lane.b32.xlu0 %v1816_v39, %s3420_s9  ;;  %2472 = vrot.lane.b32.xlu1 %v4590_v12, %s3422_s10 }
 0x3b1   : > { %v4650_v19 = vpop.permute.xlu1 %2432  ;;  %v2299_v52 = vpop.permute.xlu0 %2298 }
 0x3b2   : > { %v2636_v55 = vsel %vm325_vm0, %v4301_v9, %v2299_v52 }
 0x3b3   : > { %v2644_v28 = vsel %vm2188_vm3, %v2636_v55, %v4516_v56  ;;  %2616 = vrot.lane.b32.xlu1 %v1816_v39, %s3418_s7  ;;  %2556 = vrot.lane.b32.xlu0 %v4629_v32, %s3422_s10 }
 0x3b4   : > { %v2652_v20 = vsel %vm2197_vm4, %v2644_v28, %v4530_v31 }
 0x3b5   : > { %2778 = vst [vmem:[%s4008_s13 + $0x1a0] sm:$0xff] %v2652_v20  ;;  %v4664_v5 = vpop.permute.xlu0 %2418  ;;  %v2301_v30 = vpop.permute.xlu1 %2300 }
 0x3b6   : > { %v2637_v9 = vsel %vm325_vm0, %v4330_v49, %v2301_v30 }
 0x3b7   : > { %v2645_v56 = vsel %vm2188_vm3, %v2637_v9, %v4532_v38  ;;  %2554 = vrot.lane.b32.xlu1 %v4606_v36, %s3422_s10  ;;  %2552 = vrot.lane.b32.xlu0 %v4645_v24, %s3422_s10 }
 0x3b8   : > { %v2653_v31 = vsel %vm2197_vm4, %v2645_v56, %v4538_v34 }
 0x3b9   : > { %2786 = vst [vmem:[%s4008_s13 + $0x1e0] sm:$0xff] %v2653_v31  ;;  %v2443_v22 = vpop.permute.xlu0 %2442  ;;  %v2421_v47 = vpop.permute.xlu1 %2420 }
 0x3bb   : > { %2550 = vrot.lane.b32.xlu1 %v4616_v51, %s3422_s10  ;;  %2564 = vrot.lane.b32.xlu0 %v4679_v45, %s3422_s10 }
 0x3bd   : > { %v2295_v49 = vpop.permute.xlu0 %2294  ;;  %v2445_v38 = vpop.permute.xlu1 %2444 }
 0x3be   : > { %v2634_v62 = vsel %vm325_vm0, %v4314_v0, %v2295_v49 }
 0x3bf   : > { %v2642_v34 = vsel %vm2188_vm3, %v2634_v62, %v4552_v3  ;;  %2562 = vrot.lane.b32.xlu1 %v4652_v46, %s3422_s10  ;;  %2560 = vrot.lane.b32.xlu0 %v4685_v4, %s3422_s10 }
 0x3c0   : > { %v2650_v57 = vsel %vm2197_vm4, %v2642_v34, %v4566_v13 }
 0x3c1   : > { %2762 = vst [vmem:[%s4008_s13 + $0x120] sm:$0xff] %v2650_v57  ;;  %v2415_v11 = vpop.permute.xlu0 %2414  ;;  %v2297_v27 = vpop.permute.xlu1 %2296 }
 0x3c2   : > { %v2635_v43 = vsel %vm325_vm0, %v4362_v21, %v2297_v27 }
 0x3c3   : > { %v2643_v0 = vsel %vm2188_vm3, %v2635_v43, %v4568_v10  ;;  %2558 = vrot.lane.b32.xlu1 %v4666_v17, %s3422_s10  ;;  %2618 = vrot.lane.b32.xlu0 %v4608_v8, %s3418_s7 }
 0x3c4   : > { %v2651_v3 = vsel %vm2197_vm4, %v2643_v0, %v4574_v63 }
 0x3c5   : > { %2770 = vst [vmem:[%s4008_s13 + $0x160] sm:$0xff] %v2651_v3  ;;  %v2439_v13 = vpop.permute.xlu0 %2438  ;;  %v2417_v29 = vpop.permute.xlu1 %2416 }
 0x3c7   : > { %2620 = vrot.lane.b32.xlu1 %v3222_v60, %s3418_s7  ;;  %s3335_s7 = sshll.u32 %s3424_s5, 4  ;;  %s3336_s7 = int_to_ptr.vmem [resolvable:$false] %s3335_s7 }
 0x3c8   : > { %s3337_s8 = scalar_lea.vmem %s3336_s7, 16384  ;;  %p3338_p1 = scmp.lt.s32.totalorder %s4847_s21, %s3336_s7 }
 0x3c9   : > { %v2441_v14 = vpop.permute.xlu1 %2440  ;;  %v2379_v21 = vpop.permute.xlu0 %2378  ;;  %p3339_p3 = scmp.lt.s32.totalorder %s3337_s8, %s3331_s25 }
 0x3ca   : > { %v2656_v10 = vsel %vm325_vm0, %v4369_v58, %v2379_v21 }
 0x3cb   : > { %v2664_v2 = vsel %vm2188_vm3, %v2656_v10, %v4588_v23  ;;  %p3340_p5 = por %p3339_p3, %p3338_p1 }
 0x3cc   : > { %v2672_v8 = vsel %vm2197_vm4, %v2664_v2, %v4602_v50 }
 0x3cd   : > { %2747 = vst [vmem:[%s4008_s13 + $0xa8] sm:$0xff] %v2672_v8  ;;  %v2499_v63 = vpop.permute.xlu0 %2498  ;;  %v2381_v1 = vpop.permute.xlu1 %2380  ;;  %p3341_p6 = pnand %p3340_p5, %p3334_p0 }
 0x3ce   : > { %v2657_v39 = vsel %vm325_vm0, %v4398_v25, %v2381_v1 }
 0x3cf   : > { %v2665_v60 = vsel %vm2188_vm3, %v2657_v39, %v4604_v26 }
 0x3d0   : > { %v2673_v58 = vsel %vm2197_vm4, %v2665_v60, %v4614_v6 }
 0x3d1   : > { %2755 = vst [vmem:[%s4008_s13 + $0xe8] sm:$0xff] %v2673_v58  ;;  %v2523_v52 = vpop.permute.xlu0 %2522  ;;  %v2501_v23 = vpop.permute.xlu1 %2500 }
 0x3d5   : > { %v2375_v55 = vpop.permute.xlu0 %2374  ;;  %v2525_v28 = vpop.permute.xlu1 %2524 }
 0x3d6   : > { %v2654_v50 = vsel %vm325_vm0, %v4382_v53, %v2375_v55 }
 0x3d7   : > { %v2662_v20 = vsel %vm2188_vm3, %v2654_v50, %v4627_v59 }
 0x3d8   : > { %v2670_v25 = vsel %vm2197_vm4, %v2662_v20, %v4641_v41 }
 0x3d9   : > { %2731 = vst [vmem:[%s4008_s13 + $0x28] sm:$0xff] %v2670_v25  ;;  %v2495_v26 = vpop.permute.xlu0 %2494  ;;  %v2377_v30 = vpop.permute.xlu1 %2376 }
 0x3da   : > { %v2655_v6 = vsel %vm325_vm0, %v4430_v33, %v2377_v30 }
 0x3db   : > { %v2663_v9 = vsel %vm2188_vm3, %v2655_v6, %v4643_v18 }
 0x3dc   : > { %v2671_v53 = vsel %vm2197_vm4, %v2663_v9, %v4650_v19 }
 0x3dd   : > { %2739 = vst [vmem:[%s4008_s13 + $0x68] sm:$0xff] %v2671_v53  ;;  %v2519_v56 = vpop.permute.xlu0 %2518  ;;  %v2497_v59 = vpop.permute.xlu1 %2496 }
 0x3e1   : > { %v2521_v31 = vpop.permute.xlu1 %2520  ;;  %v2387_v49 = vpop.permute.xlu0 %2386 }
 0x3e2   : > { %v2660_v41 = vsel %vm325_vm0, %v4437_v7, %v2387_v49 }
 0x3e3   : > { %v2668_v62 = vsel %vm2188_vm3, %v2660_v41, %v4664_v5 }
 0x3e4   : > { %v2676_v33 = vsel %vm2197_vm4, %v2668_v62, %v2443_v22 }
 0x3e5   : > { %2779 = vst [vmem:[%s4008_s13 + $0x1a8] sm:$0xff] %v2676_v33  ;;  %v2507_v18 = vpop.permute.xlu0 %2506  ;;  %v2389_v34 = vpop.permute.xlu1 %2388 }
 0x3e6   : > { %v2661_v19 = vsel %vm325_vm0, %v4466_v37, %v2389_v34 }
 0x3e7   : > { %v2669_v57 = vsel %vm2188_vm3, %v2661_v19, %v2421_v47 }
 0x3e8   : > { %v2677_v27 = vsel %vm2197_vm4, %v2669_v57, %v2445_v38 }
 0x3e9   : > { %2787 = vst [vmem:[%s4008_s13 + $0x1e8] sm:$0xff] %v2677_v27  ;;  %v2531_v43 = vpop.permute.xlu0 %2530  ;;  %v2509_v7 = vpop.permute.xlu1 %2508 }
 0x3ed   : > { %v2383_v0 = vpop.permute.xlu0 %2382  ;;  %v2533_v3 = vpop.permute.xlu1 %2532 }
 0x3ee   : > { %v2658_v5 = vsel %vm325_vm0, %v4450_v44, %v2383_v0 }
 0x3ef   : > { %v2666_v22 = vsel %vm2188_vm3, %v2658_v5, %v2415_v11 }
 0x3f0   : > { %v2674_v21 = vsel %vm2197_vm4, %v2666_v22, %v2439_v13 }
 0x3f1   : > { %2763 = vst [vmem:[%s4008_s13 + $0x128] sm:$0xff] %v2674_v21  ;;  %v2503_v37 = vpop.permute.xlu0 %2502  ;;  %v2385_v10 = vpop.permute.xlu1 %2384 }
 0x3f2   : > { %v2659_v47 = vsel %vm325_vm0, %v4498_v15, %v2385_v10 }
 0x3f3   : > { %v2667_v38 = vsel %vm2188_vm3, %v2659_v47, %v2417_v29 }
 0x3f4   : > { %v2675_v2 = vsel %vm2197_vm4, %v2667_v38, %v2441_v14 }
 0x3f5   : > { %2771 = vst [vmem:[%s4008_s13 + $0x168] sm:$0xff] %v2675_v2  ;;  %v2527_v8 = vpop.permute.xlu0 %2526  ;;  %v2505_v1 = vpop.permute.xlu1 %2504 }
 0x3f9   : > { %v2529_v44 = vpop.permute.xlu1 %2528  ;;  %v2467_v39 = vpop.permute.xlu0 %2466 }
 0x3fa   : > { %v2680_v11 = vsel %vm325_vm0, %v4505_v40, %v2467_v39 }
 0x3fb   : > { %v2688_v13 = vsel %vm2188_vm3, %v2680_v11, %v2499_v63 }
 0x3fc   : > { %v2696_v60 = vsel %vm2197_vm4, %v2688_v13, %v2523_v52 }
 0x3fd   : > { %2748 = vst [vmem:[%s4008_s13 + $0xb0] sm:$0xff] %v2696_v60  ;;  %v2587_v15 = vpop.permute.xlu1 %2586  ;;  %v2611_v58 = vpop.permute.xlu0 %2610 }
 0x401   : > { %v4764_v29 = vpop.permute.xlu1 %2582  ;;  %v2463_v14 = vpop.permute.xlu0 %2462 }
 0x402   : > { %v2678_v55 = vsel %vm325_vm0, %v4518_v35, %v2463_v14 }
 0x403   : > { %v2686_v50 = vsel %vm2188_vm3, %v2678_v55, %v2495_v26 }
 0x404   : > { %v2694_v20 = vsel %vm2197_vm4, %v2686_v50, %v2519_v56 }
 0x405   : > { %2732 = vst [vmem:[%s4008_s13 + $0x30] sm:$0xff] %v2694_v20  ;;  %v2607_v40 = vpop.permute.xlu0 %2606  ;;  %v2469_v63 = vpop.permute.xlu1 %2468 }
 0x406   : > { %v2681_v52 = vsel %vm325_vm0, %v4534_v16, %v2469_v63 }
 0x407   : > { %v2689_v25 = vsel %vm2188_vm3, %v2681_v52, %v2501_v23 }
 0x408   : > { %v2697_v30 = vsel %vm2197_vm4, %v2689_v25, %v2525_v28 }
 0x409   : > { %2756 = vst [vmem:[%s4008_s13 + $0xf0] sm:$0xff] %v2697_v30  ;;  %v2589_v6 = vpop.permute.xlu0 %2588  ;;  %v2613_v9 = vpop.permute.xlu1 %2612 }
 0x40d   : > { %v2585_v35 = vpop.permute.xlu0 %2584  ;;  %v2465_v53 = vpop.permute.xlu1 %2464 }
 0x40e   : > { %v2679_v26 = vsel %vm325_vm0, %v4540_v42, %v2465_v53 }
 0x40f   : > { %v2687_v56 = vsel %vm2188_vm3, %v2679_v26, %v2497_v59 }
 0x410   : > { %v2695_v49 = vsel %vm2197_vm4, %v2687_v56, %v2521_v31 }
 0x411   : > { %2740 = vst [vmem:[%s4008_s13 + $0x70] sm:$0xff] %v2695_v49  ;;  %v2609_v16 = vpop.permute.xlu1 %2608  ;;  %v2475_v41 = vpop.permute.xlu0 %2474 }
 0x412   : > { %v2684_v23 = vsel %vm325_vm0, %v4554_v48, %v2475_v41 }
 0x413   : > { %v2692_v28 = vsel %vm2188_vm3, %v2684_v23, %v2507_v18 }
 0x414   : > { %v2700_v62 = vsel %vm2197_vm4, %v2692_v28, %v2531_v43 }
 0x415   : > { %2780 = vst [vmem:[%s4008_s13 + $0x1b0] sm:$0xff] %v2700_v62  ;;  %v2595_v33 = vpop.permute.xlu1 %2594  ;;  %v2471_v34 = vpop.permute.xlu0 %2470 }
 0x416   : > { %v2682_v42 = vsel %vm325_vm0, %v4570_v54, %v2471_v34 }
 0x417   : > { %v2690_v59 = vsel %vm2188_vm3, %v2682_v42, %v2503_v37 }
 0x418   : > { %v2698_v31 = vsel %vm2197_vm4, %v2690_v59, %v2527_v8 }
 0x419   : > { %2764 = vst [vmem:[%s4008_s13 + $0x130] sm:$0xff] %v2698_v31  ;;  %v2591_v19 = vpop.permute.xlu1 %2590  ;;  %v2615_v57 = vpop.permute.xlu0 %2614 }
 0x41d   : > { %v2597_v48 = vpop.permute.xlu0 %2596  ;;  %v2477_v27 = vpop.permute.xlu1 %2476 }
 0x41e   : > { %v2685_v18 = vsel %vm325_vm0, %v4576_v61, %v2477_v27 }
 0x41f   : > { %v2693_v43 = vsel %vm2188_vm3, %v2685_v18, %v2509_v7 }
 0x420   : > { %v2701_v0 = vsel %vm2197_vm4, %v2693_v43, %v2533_v3 }
 0x421   : > { %2788 = vst [vmem:[%s4008_s13 + $0x1f0] sm:$0xff] %v2701_v0  ;;  %v2593_v54 = vpop.permute.xlu0 %2592  ;;  %v2473_v5 = vpop.permute.xlu1 %2472 }
 0x422   : > { %v2683_v22 = vsel %vm325_vm0, %v4590_v12, %v2473_v5 }
 0x423   : > { %v2691_v21 = vsel %vm2188_vm3, %v2683_v22, %v2505_v1 }
 0x424   : > { %v2699_v37 = vsel %vm2197_vm4, %v2691_v21, %v2529_v44 }
 0x425   : > { %2772 = vst [vmem:[%s4008_s13 + $0x170] sm:$0xff] %v2699_v37  ;;  %v2617_v10 = vpop.permute.xlu1 %2616  ;;  %v2557_v47 = vpop.permute.xlu0 %2556 }
 0x426   : > { %v2705_v61 = vsel %vm325_vm0, %v4629_v32, %v2557_v47 }
 0x427   : > { %v2713_v7 = vsel %vm2188_vm3, %v2705_v61, %v2589_v6 }
 0x428   : > { %v2721_v3 = vsel %vm2197_vm4, %v2713_v7, %v2613_v9 }
 0x429   : > { %2757 = vst [vmem:[%s4008_s13 + $0xf8] sm:$0xff] %v2721_v3  ;;  %v2555_v38 = vpop.permute.xlu1 %2554  ;;  %v2553_v12 = vpop.permute.xlu0 %2552 }
 0x42a   : > { %v2704_v2 = vsel %vm325_vm0, %v4606_v36, %v2555_v38  ;;  %v2703_v8 = vsel %vm325_vm0, %v4645_v24, %v2553_v12 }
 0x42b   : > { %v2712_v1 = vsel %vm2188_vm3, %v2704_v2, %v2587_v15  ;;  %v2711_v44 = vsel %vm2188_vm3, %v2703_v8, %v2585_v35 }
 0x42c   : > { %v2720_v32 = vsel %vm2197_vm4, %v2712_v1, %v2611_v58  ;;  %v2719_v39 = vsel %vm2197_vm4, %v2711_v44, %v2609_v16 }
 0x42d   : > { %2749 = vst [vmem:[%s4008_s13 + $0xb8] sm:$0xff] %v2720_v32  ;;  %2741 = vst [vmem:[%s4008_s13 + $0x78] sm:$0xff] %v2719_v39  ;;  %v2551_v11 = vpop.permute.xlu1 %2550  ;;  %v2565_v13 = vpop.permute.xlu0 %2564 }
 0x42e   : > { %v2702_v36 = vsel %vm325_vm0, %v4616_v51, %v2551_v11  ;;  %v2709_v63 = vsel %vm325_vm0, %v4679_v45, %v2565_v13 }
 0x42f   : > { %v2710_v24 = vsel %vm2188_vm3, %v2702_v36, %v4764_v29  ;;  %v2717_v45 = vsel %vm2188_vm3, %v2709_v63, %v2597_v48 }
 0x430   : > { %v2718_v60 = vsel %vm2197_vm4, %v2710_v24, %v2607_v40 }
 0x431   : > { %2733 = vst [vmem:[%s4008_s13 + $0x38] sm:$0xff] %v2718_v60  ;;  %v2563_v15 = vpop.permute.xlu1 %2562  ;;  %v2561_v58 = vpop.permute.xlu0 %2560 }
 0x432   : > { %v2708_v14 = vsel %vm325_vm0, %v4652_v46, %v2563_v15  ;;  %v2707_v55 = vsel %vm325_vm0, %v4685_v4, %v2561_v58 }
 0x433   : > { %v2715_v50 = vsel %vm2188_vm3, %v2707_v55, %v2593_v54  ;;  %v2716_v20 = vsel %vm2188_vm3, %v2708_v14, %v2595_v33 }
 0x434   : > { %v2723_v51 = vsel %vm2197_vm4, %v2715_v50, %v2617_v10 }
 0x435   : > { %2773 = vst [vmem:[%s4008_s13 + $0x178] sm:$0xff] %v2723_v51  ;;  %v2559_v29 = vpop.permute.xlu1 %2558  ;;  %v2619_v40 = vpop.permute.xlu0 %2618 }
 0x436   : > { %v2706_v46 = vsel %vm325_vm0, %v4666_v17, %v2559_v29  ;;  %v2724_v4 = vsel %vm2197_vm4, %v2716_v20, %v2619_v40 }
 0x437   : > { %v2714_v52 = vsel %vm2188_vm3, %v2706_v46, %v2591_v19  ;;  %2781 = vst [vmem:[%s4008_s13 + $0x1b8] sm:$0xff] %v2724_v4 }
 0x438   : > { %v2722_v25 = vsel %vm2197_vm4, %v2714_v52, %v2615_v57 }
 0x439   : > { %2765 = vst [vmem:[%s4008_s13 + $0x138] sm:$0xff] %v2722_v25  ;;  %v2621_v30 = vpop.permute.xlu1 %2620 }
 0x43a   : > { %v2725_v17 = vsel %vm2197_vm4, %v2717_v45, %v2621_v30 }
 0x43b   : > { %2789 = vst [vmem:[%s4008_s13 + $0x1f8] sm:$0xff] %v2725_v17 }
 0x43c   : > { %3344 = shalt.err (!%p3341_p6)
}
 0x43d   : > { %s3345_s27 = scalar_lea.hbm %s4843_s26, 8192  ;;  %s3349_s12 = scalar_lea.hbm %s4902_s4, 16384 }
 0x43e   : > { %p3346_p7 = scmp.ne.s32.totalorder %s4843_s26, %s3345_s27  ;;  %p3350_p13 = scmp.lt.s32.totalorder %s4843_s26, %s4902_s4 }
 0x43f   : > { %p3351_p2 = scmp.lt.s32.totalorder %s3349_s12, %s3345_s27 }
 0x440   : > { %p3347_p10 = pnand %p3346_p7, %p3502_p9 }
 0x441   : > { %p3352_p8 = por %p3351_p2, %p3350_p13 }
 0x442   : > { %p3348_p4 = pneg %p3347_p10 }
 0x444   : > { %p3353_p12 = pnand %p3352_p8, %p3348_p4 }
 0x446   : > { %3356 = shalt.err (!%p3353_p12)
}
 0x447   : > { %s3425_s22 = smov 1024  }
 0x448   : > { %3225 = dma.vmem_to_hbm [thread:$0]  (%p3502_p9), %s4847_s21, 8192, %s4843_s26, %s2791_s18, %s3425_s22, %s3425_s22, %s3420_s9  }
 0x449 PF: > { %s2821_s24 = sand.u32 1, %s3391_s15   ;;  %p4908_p0 = scmp.ge.s32.totalorder %s3411_s20, 2 }
 0x44a   : > { %s2822_s25 = scalar_lea.sflag [#allocation4], %s2821_s24 }
 0x44b   : > { %p3232_p1 = pnand %p4908_p0, %p3509_p11 }
 0x44d   : > { %p3233_p3 = pneg %p3232_p1 }
 0x44f   : > { %3386 = dma.done.wait (%p3233_p3), %s2822_s25, 8192  }
 0x450   : > { %3388 = vsyncadd (%p3233_p3), %s2822_s25, 4294959104  ;;  %s20_s20 = sadd.s32 1, %s3411_s20   ;;  %s4909_s15 = smov %s3395_s16 }
 0x451   : > { %p17_p5 = scmp.ge.s32.totalorder %s20_s20, 4   ;;  %s4910_s16 = smov %s3399_s17 }
 0x452   : > { %s4911_s17 = smov %s3507_s29  ;;  %s4912_s18 = smov %s3407_s19 }
 0x453   : > { %s4913_s19 = smov %s4915_s23  ;;  %19 = sbr.rel (!%p17_p5) target bundleno = 6 (0x6), region = 81 }
 0x458   :  { %2827 = vsyncpa [#allocation3], 1 }
 0x459   :  { %2829 = vsyncpa [#allocation3 + $0x1], 1 }
 0x45a   :  { %2830 = vsyncpa [#allocation4], 1 }
 0x45b   :  { %2832 = vsyncpa [#allocation4 + $0x1], 1 }

</bundles_post_ra>
